<compile_context>
chip_gen: v6e
topology: v6e:2x2x1
jax: 0.10.0
libtpu: 0.0.40
codegen_flags: <defaults>
</compile_context>

<pallas_src>
import functools

import jax
import jax.numpy as jnp
from jax.experimental import pallas as pl
from jax.experimental.pallas import tpu as pltpu

# Conservative cap: v7x has 64 MiB physical VMEM per TensorCore (v5e/v6e: 128 MiB).
_VMEM_CAP_BYTES = 64 * 1024 * 1024


def ffn_kernel(x_ref, w1_ref, b1_ref, w2_ref, b2_ref, o_ref, acc_ref, *, f_chunk):
    # x_ref: (TM, E) f32, w1_ref: (E, F) bf16, b1_ref: (1, F) f32,
    # w2_ref: (F, E) bf16, b2_ref: (1, E) f32, o_ref: (TM, E) f32,
    # acc_ref: (TM, E) f32 VMEM scratch.
    x = x_ref[...]                                  # keep f32 copy for residual
    x_bf = x.astype(jnp.bfloat16)                   # bf16 MXU operand

    F = w1_ref.shape[1]
    n_chunks = F // f_chunk

    acc_ref[...] = jnp.zeros_like(acc_ref)
    # Static (unrolled) loop over 128-aligned F chunks: keeps the live h
    # intermediate at tm*f_chunk instead of tm*F.
    for c in range(n_chunks):
        f0 = c * f_chunk
        # l1 chunk + bias + ReLU (dropout p=0 -> identity)
        h = jnp.dot(x_bf, w1_ref[:, f0:f0 + f_chunk],
                    preferred_element_type=jnp.float32)
        h = jnp.maximum(h + b1_ref[:, f0:f0 + f_chunk], 0.0)
        # l2 chunk, accumulated in f32
        acc_ref[...] += jnp.dot(h.astype(jnp.bfloat16),
                                w2_ref[f0:f0 + f_chunk, :],
                                preferred_element_type=jnp.float32)

    # l2 bias + residual add (all f32), lane-dense store.
    o_ref[...] = (acc_ref[...] + b2_ref[...] + x).astype(o_ref.dtype)


def prepare_ffn_params(w1, b1, w2, b2, weight_dtype=jnp.bfloat16):
    """One-time parameter prep (do this OUTSIDE the hot path).

    torch layout in:  w1 (F, E), b1 (F,), w2 (E, F), b2 (E,)
    kernel layout out: W1 (E, F) bf16, b1 (1, F) f32, W2 (F, E) bf16, b2 (1, E) f32
    """
    w1_t = w1.T.astype(weight_dtype)
    w2_t = w2.T.astype(weight_dtype)
    b1_r = b1.reshape(1, -1).astype(jnp.float32)
    b2_r = b2.reshape(1, -1).astype(jnp.float32)
    return w1_t, b1_r, w2_t, b2_r


def _resident_spec(shape):
    """BlockSpec for a grid-invariant operand: constant index_map,
    single-buffered (no point double-buffering something that never changes)."""
    idx = lambda i: (0,) * len(shape)
    try:
        return pl.BlockSpec(shape, idx, pipeline_mode=pl.Buffered(1))
    except (TypeError, AttributeError):
        # Older jax without pipeline_mode: fall back to default double-buffering
        # (costs 2x the weight bytes of VMEM).
        return pl.BlockSpec(shape, idx)


def _vmem_budget_bytes(tm, E, F, f_chunk):
    weights = 2 * E * F * 2                              # W1 + W2 bf16, single-buffered
    biases = 2 * (F + E) * 4                             # b1 + b2 f32, double-buffered
    io = 2 * 2 * tm * E * 4                              # x-in + out tiles f32, double-buffered
    acc = tm * E * 4                                     # f32 accumulator scratch
    live = tm * E * (4 + 2) + tm * f_chunk * (4 + 2)     # x, x_bf, h, h_bf
    return weights + biases + io + acc + live


def _pick_f_chunk(F):
    for cand in (512, 1024, 256, 128):
        if F % cand == 0:
            return cand
    return F


def _pick_tm(M, E, F, f_chunk, vmem_cap_bytes):
    # Biggest multiple-of-128 (then -of-8) tile that divides M, fits the VMEM
    # budget, and — when M is large enough — leaves >= 2 grid steps so the
    # "parallel" M axis can be sharded across both v7x TensorCores.
    for cand in (1024, 512, 256, 128, 64, 32, 16, 8):
        if M % cand != 0:
            continue
        if M >= 256 and M // cand < 2:
            continue
        if _vmem_budget_bytes(cand, E, F, f_chunk) <= vmem_cap_bytes:
            return cand
    # TODO(synk): pad M up to a multiple of 8/128 for ragged token counts.
    return M


def ffn_forward(x, w1_t, b1_r, w2_t, b2_r, *, tm=None, f_chunk=None):
    """x: (B, S, E) f32.  Params already in kernel layout (see prepare_ffn_params).

    Call via jax.jit(ffn_forward, donate_argnums=0) so the output truly reuses
    x's HBM buffer (input_output_aliases below).
    """
    B, S, E = x.shape
    F = w1_t.shape[1]
    M = B * S
    if f_chunk is None:
        f_chunk = _pick_f_chunk(F)
    if tm is None:
        tm = _pick_tm(M, E, F, f_chunk, _VMEM_CAP_BYTES)
    assert M % tm == 0 and F % f_chunk == 0

    x2 = x.reshape(M, E)

    cost = pl.CostEstimate(
        flops=4 * M * E * F,                       # two GEMMs
        transcendentals=0,
        bytes_accessed=(M * E * 4                  # x in (f32)
                        + 2 * E * F * 2            # weights (bf16)
                        + (F + E) * 4              # biases (f32)
                        + M * E * 4),              # out (f32)
    )

    # Budget-derived scoped-VMEM limit (floor at the 32 MiB default, cap at
    # v7x physical 64 MiB).
    budget = _vmem_budget_bytes(tm, E, F, f_chunk)
    vmem_limit = min(max(int(1.25 * budget) + (2 << 20), 32 << 20), _VMEM_CAP_BYTES)

    kernel = functools.partial(ffn_kernel, f_chunk=f_chunk)

    out = pl.pallas_call(
        kernel,
        out_shape=jax.ShapeDtypeStruct((M, E), x.dtype),
        grid_spec=pltpu.PrefetchScalarGridSpec(
            num_scalar_prefetch=0,
            grid=(M // tm,),
            in_specs=[
                pl.BlockSpec((tm, E), lambda i: (i, 0)),   # x tile (f32), double-buffered
                _resident_spec((E, F)),                    # W1 (bf16, resident, 1-buffered)
                _resident_spec((1, F)),                    # b1 (f32)
                _resident_spec((F, E)),                    # W2 (bf16, resident, 1-buffered)
                _resident_spec((1, E)),                    # b2 (f32)
            ],
            out_specs=pl.BlockSpec((tm, E), lambda i: (i, 0)),
            scratch_shapes=[pltpu.VMEM((tm, E), jnp.float32)],
        ),
        compiler_params=pltpu.CompilerParams(
            dimension_semantics=("parallel",),
            vmem_limit_bytes=vmem_limit),
        cost_estimate=cost,
        # out aliases flattened x (see safety invariant in the header comment).
        input_output_aliases={0: 0},
    )(x2, w1_t, b1_r, w2_t, b2_r)
    return out.reshape(B, S, E)


if __name__ == "__main__":
    # Small shapes matching the module defaults: batch=2, seq=8,
    # embed_dim=256, feedforward_channels=1024, ffn_drop=0.0, act='ReLU'.
    B, S, E, F = 2, 8, 256, 1024

    key = jax.random.PRNGKey(0)
    k_x, k_w1, k_b1, k_w2, k_b2 = jax.random.split(key, 5)

    x = jax.random.normal(k_x, (B, S, E), dtype=jnp.float32)
    # Deterministic synthetic parameters (nn.Linear shapes, torch layout).
    w1 = jax.random.normal(k_w1, (F, E), dtype=jnp.float32) * 0.02
    b1 = jax.random.normal(k_b1, (F,), dtype=jnp.float32) * 0.02
    w2 = jax.random.normal(k_w2, (E, F), dtype=jnp.float32) * 0.02
    b2 = jax.random.normal(k_b2, (E,), dtype=jnp.float32) * 0.02

    # One-time param prep (transpose + bf16 cast) outside the hot path.
    params = prepare_ffn_params(w1, b1, w2, b2)

    # References are computed BEFORE the kernel call because x is donated below.
    # Reference 1: same mixed precision as the kernel (bf16 MXU operands,
    # f32 accumulation / bias / ReLU / residual).
    x_bf = x.astype(jnp.bfloat16)
    h = jnp.einsum("bse,ef->bsf", x_bf, params[0],
                   preferred_element_type=jnp.float32) + b1
    h = jnp.maximum(h, 0.0)
    ref_bf = jnp.einsum("bsf,fe->bse", h.astype(jnp.bfloat16), params[2],
                        preferred_element_type=jnp.float32) + b2 + x
    # Reference 2: pure-f32 forward of the original module (looser tolerance
    # to account for bf16 matmul operands).
    h32 = jnp.maximum(jnp.einsum("bse,fe->bsf", x, w1) + b1, 0.0)
    ref32 = jnp.einsum("bsf,ef->bse", h32, w2) + b2 + x
    ref_bf, ref32 = jax.block_until_ready((ref_bf, ref32))

    # Donate x so input_output_aliases={0: 0} is a true in-place update.
    ffn_jit = jax.jit(ffn_forward, donate_argnums=0)
    out = jax.block_until_ready(ffn_jit(x, *params))

    assert out.shape == (B, S, E)
    assert jnp.allclose(out, ref_bf, atol=2e-3, rtol=2e-3)
    assert jnp.allclose(out, ref32, atol=5e-2, rtol=5e-2)

    print("KERNEL_OK")
</pallas_src>

<mosaic_0001>
module attributes {stable_mosaic.version = 11 : i64} {
  func.func @ffn_kernel(%arg0: i32, %arg1: memref<16x256xf32, #tpu.memory_space<vmem>>, %arg2: memref<256x1024xbf16, #tpu.memory_space<vmem>>, %arg3: memref<1x1024xf32, #tpu.memory_space<vmem>>, %arg4: memref<1024x256xbf16, #tpu.memory_space<vmem>>, %arg5: memref<1x256xf32, #tpu.memory_space<vmem>>, %arg6: memref<16x256xf32, #tpu.memory_space<vmem>>, %arg7: memref<16x256xf32, #tpu.memory_space<vmem>>) attributes {dimension_semantics = [#tpu.dimension_semantics<parallel>], iteration_bounds = array<i64: 1>, scalar_prefetch = 0 : i64, scratch_operands = 1 : i64, tpu.core_type = #tpu.core_type<tc>, window_params = [{transform_indices = @transform_0, window_bounds = array<i64: 16, 256>}, {pipeline_mode = #tpu.pipeline_mode<synchronous>, transform_indices = @transform_1, window_bounds = array<i64: 256, 1024>}, {pipeline_mode = #tpu.pipeline_mode<synchronous>, transform_indices = @transform_2, window_bounds = array<i64: 1, 1024>}, {pipeline_mode = #tpu.pipeline_mode<synchronous>, transform_indices = @transform_3, window_bounds = array<i64: 1024, 256>}, {pipeline_mode = #tpu.pipeline_mode<synchronous>, transform_indices = @transform_4, window_bounds = array<i64: 1, 256>}, {transform_indices = @transform_5, window_bounds = array<i64: 16, 256>}]} {
    %c0 = arith.constant 0 : index
    %c0_0 = arith.constant 0 : index
    %0 = vector.load %arg1[%c0, %c0_0] : memref<16x256xf32, #tpu.memory_space<vmem>>, vector<16x256xf32>
    %1 = arith.truncf %0 : vector<16x256xf32> to vector<16x256xbf16>
    %cst = arith.constant 0.000000e+00 : f32
    %2 = vector.broadcast %cst : f32 to vector<16x256xf32>
    %c0_1 = arith.constant 0 : index
    %c0_2 = arith.constant 0 : index
    %3 = vector.load %arg7[%c0_1, %c0_2] : memref<16x256xf32, #tpu.memory_space<vmem>>, vector<16x256xf32>
    tpu.vector_store %arg7[%c0_1, %c0_2], %2 {strides = array<i32>} : memref<16x256xf32, #tpu.memory_space<vmem>>, vector<16x256xf32>,
    %c0_3 = arith.constant 0 : index
    %c0_4 = arith.constant 0 : index
    %4 = vector.load %arg2[%c0_3, %c0_4] : memref<256x1024xbf16, #tpu.memory_space<vmem>>, vector<256x512xbf16>
    %cst_5 = arith.constant dense<0.000000e+00> : vector<16x512xf32>
    %5 = tpu.matmul %1, %4, %cst_5 {dimension_numbers = #tpu.dot_dimension_numbers<[1], [0], [0], [1], [0, 0, 1, 1], [], []>} : vector<16x256xbf16>, vector<256x512xbf16>, vector<16x512xf32> -> vector<16x512xf32>
    %c0_6 = arith.constant 0 : index
    %c0_7 = arith.constant 0 : index
    %6 = vector.load %arg3[%c0_6, %c0_7] : memref<1x1024xf32, #tpu.memory_space<vmem>>, vector<1x512xf32>
    %7 = vector.broadcast %6 : vector<1x512xf32> to vector<16x512xf32>
    %8 = arith.addf %5, %7 : vector<16x512xf32>
    %cst_8 = arith.constant 0.000000e+00 : f32
    %9 = vector.broadcast %cst_8 : f32 to vector<16x512xf32>
    %10 = arith.maximumf %8, %9 : vector<16x512xf32>
    %c0_9 = arith.constant 0 : index
    %c0_10 = arith.constant 0 : index
    %11 = vector.load %arg7[%c0_9, %c0_10] : memref<16x256xf32, #tpu.memory_space<vmem>>, vector<16x256xf32>
    %12 = arith.truncf %10 : vector<16x512xf32> to vector<16x512xbf16>
    %c0_11 = arith.constant 0 : index
    %c0_12 = arith.constant 0 : index
    %13 = vector.load %arg4[%c0_11, %c0_12] : memref<1024x256xbf16, #tpu.memory_space<vmem>>, vector<512x256xbf16>
    %cst_13 = arith.constant dense<0.000000e+00> : vector<16x256xf32>
    %14 = tpu.matmul %12, %13, %cst_13 {dimension_numbers = #tpu.dot_dimension_numbers<[1], [0], [0], [1], [0, 0, 1, 1], [], []>} : vector<16x512xbf16>, vector<512x256xbf16>, vector<16x256xf32> -> vector<16x256xf32>
    %15 = arith.addf %11, %14 : vector<16x256xf32>
    %c0_14 = arith.constant 0 : index
    %c0_15 = arith.constant 0 : index
    %16 = vector.load %arg7[%c0_14, %c0_15] : memref<16x256xf32, #tpu.memory_space<vmem>>, vector<16x256xf32>
    tpu.vector_store %arg7[%c0_14, %c0_15], %15 {strides = array<i32>} : memref<16x256xf32, #tpu.memory_space<vmem>>, vector<16x256xf32>,
    %c0_16 = arith.constant 0 : index
    %c512 = arith.constant 512 : index
    %17 = vector.load %arg2[%c0_16, %c512] : memref<256x1024xbf16, #tpu.memory_space<vmem>>, vector<256x512xbf16>
    %cst_17 = arith.constant dense<0.000000e+00> : vector<16x512xf32>
    %18 = tpu.matmul %1, %17, %cst_17 {dimension_numbers = #tpu.dot_dimension_numbers<[1], [0], [0], [1], [0, 0, 1, 1], [], []>} : vector<16x256xbf16>, vector<256x512xbf16>, vector<16x512xf32> -> vector<16x512xf32>
    %c0_18 = arith.constant 0 : index
    %c512_19 = arith.constant 512 : index
    %19 = vector.load %arg3[%c0_18, %c512_19] : memref<1x1024xf32, #tpu.memory_space<vmem>>, vector<1x512xf32>
    %20 = vector.broadcast %19 : vector<1x512xf32> to vector<16x512xf32>
    %21 = arith.addf %18, %20 : vector<16x512xf32>
    %cst_20 = arith.constant 0.000000e+00 : f32
    %22 = vector.broadcast %cst_20 : f32 to vector<16x512xf32>
    %23 = arith.maximumf %21, %22 : vector<16x512xf32>
    %c0_21 = arith.constant 0 : index
    %c0_22 = arith.constant 0 : index
    %24 = vector.load %arg7[%c0_21, %c0_22] : memref<16x256xf32, #tpu.memory_space<vmem>>, vector<16x256xf32>
    %25 = arith.truncf %23 : vector<16x512xf32> to vector<16x512xbf16>
    %c512_23 = arith.constant 512 : index
    %c0_24 = arith.constant 0 : index
    %26 = vector.load %arg4[%c512_23, %c0_24] : memref<1024x256xbf16, #tpu.memory_space<vmem>>, vector<512x256xbf16>
    %cst_25 = arith.constant dense<0.000000e+00> : vector<16x256xf32>
    %27 = tpu.matmul %25, %26, %cst_25 {dimension_numbers = #tpu.dot_dimension_numbers<[1], [0], [0], [1], [0, 0, 1, 1], [], []>} : vector<16x512xbf16>, vector<512x256xbf16>, vector<16x256xf32> -> vector<16x256xf32>
    %28 = arith.addf %24, %27 : vector<16x256xf32>
    %c0_26 = arith.constant 0 : index
    %c0_27 = arith.constant 0 : index
    %29 = vector.load %arg7[%c0_26, %c0_27] : memref<16x256xf32, #tpu.memory_space<vmem>>, vector<16x256xf32>
    tpu.vector_store %arg7[%c0_26, %c0_27], %28 {strides = array<i32>} : memref<16x256xf32, #tpu.memory_space<vmem>>, vector<16x256xf32>,
    %c0_28 = arith.constant 0 : index
    %c0_29 = arith.constant 0 : index
    %30 = vector.load %arg7[%c0_28, %c0_29] : memref<16x256xf32, #tpu.memory_space<vmem>>, vector<16x256xf32>
    %c0_30 = arith.constant 0 : index
    %c0_31 = arith.constant 0 : index
    %31 = vector.load %arg5[%c0_30, %c0_31] : memref<1x256xf32, #tpu.memory_space<vmem>>, vector<1x256xf32>
    %32 = vector.broadcast %31 : vector<1x256xf32> to vector<16x256xf32>
    %33 = arith.addf %30, %32 : vector<16x256xf32>
    %34 = arith.addf %33, %0 : vector<16x256xf32>
    %c0_32 = arith.constant 0 : index
    %c0_33 = arith.constant 0 : index
    %35 = vector.load %arg6[%c0_32, %c0_33] : memref<16x256xf32, #tpu.memory_space<vmem>>, vector<16x256xf32>
    tpu.vector_store %arg6[%c0_32, %c0_33], %34 {strides = array<i32>} : memref<16x256xf32, #tpu.memory_space<vmem>>, vector<16x256xf32>,
    return
  }
  func.func @transform_0(%arg0: i32) -> (i32, i32) {
    %c0_i32 = arith.constant 0 : i32
    %c0_i32_0 = arith.constant 0 : i32
    return %arg0, %c0_i32 : i32, i32
  }
  func.func @transform_1(%arg0: i32) -> (i32, i32) {
    %c0_i32 = arith.constant 0 : i32
    %c0_i32_0 = arith.constant 0 : i32
    %c0_i32_1 = arith.constant 0 : i32
    return %c0_i32, %c0_i32_0 : i32, i32
  }
  func.func @transform_2(%arg0: i32) -> (i32, i32) {
    %c0_i32 = arith.constant 0 : i32
    %c0_i32_0 = arith.constant 0 : i32
    %c0_i32_1 = arith.constant 0 : i32
    return %c0_i32, %c0_i32_0 : i32, i32
  }
  func.func @transform_3(%arg0: i32) -> (i32, i32) {
    %c0_i32 = arith.constant 0 : i32
    %c0_i32_0 = arith.constant 0 : i32
    %c0_i32_1 = arith.constant 0 : i32
    return %c0_i32, %c0_i32_0 : i32, i32
  }
  func.func @transform_4(%arg0: i32) -> (i32, i32) {
    %c0_i32 = arith.constant 0 : i32
    %c0_i32_0 = arith.constant 0 : i32
    %c0_i32_1 = arith.constant 0 : i32
    return %c0_i32, %c0_i32_0 : i32, i32
  }
  func.func @transform_5(%arg0: i32) -> (i32, i32) {
    %c0_i32 = arith.constant 0 : i32
    %c0_i32_0 = arith.constant 0 : i32
    return %arg0, %c0_i32 : i32, i32
  }
}

</mosaic_0001>

<bundles_post_ra>
// kernel: ffn_forward.1
= control target key start
LH: loop header
LB: loop body
LE: loop exit
PB: predicated region body
PF: predicated region fallthrough
CT: control target
= control target key end

     0   :  { %10 = vsyncpa [#allocation4], 0  ;;  %s2786_s0 = inlined_call_operand.hbm [shape: f32[16,256], index: 0, kind: input, shape index: {}, may-alias: {0,5}]   ;;  %s2787_s1 = inlined_call_operand.hbm [shape: bf16[256,1024], index: 1, kind: input, shape index: {}]   ;;  %s2788_s2 = inlined_call_operand.hbm [shape: f32[1,1024], index: 2, kind: input, shape index: {}]   ;;  %s2789_s3 = inlined_call_operand.hbm [shape: bf16[1024,256], index: 3, kind: input, shape index: {}]   ;;  %s2790_s4 = inlined_call_operand.vmem [shape: f32[1,256], index: 4, kind: input, shape index: {}]   ;;  %s2791_s5 = inlined_call_operand.hbm [shape: f32[16,256], index: 5, kind: output, shape index: {}, may-alias: {0,5}]  }
   0x1   :  { %11 = vsyncpa [#allocation7], 0 }
   0x2   :  { %12 = vsyncpa [#allocation10], 0 }
   0x3   :  { %13 = vsyncpa [#allocation5], 0  ;;  %s2674_s18 = smov [#allocation6]  }
   0x4   :  { %s31_s19 = sshll.u32 %s2674_s18, 4  ;;  %s32_s19 = int_to_ptr.vmem [resolvable:$true] %s31_s19 }
   0x5   :  { %s2574_s20 = scalar_lea.vmem %s32_s19, 16384  ;;  %p2579_p1 = scmp.lt.s32.totalorder %s32_s19, %s32_s19 }
   0x6   :  { %p2575_p0 = scmp.ne.s32.totalorder %s32_s19, %s2574_s20  ;;  %p2580_p2 = scmp.lt.s32.totalorder %s2574_s20, %s2574_s20 }
   0x8   :  { %p2581_p3 = por %p2580_p2, %p2579_p1 }
   0xa   :  { %p2582_p4 = pnand %p2581_p3, %p2575_p0 }
   0xc   :  { %2585 = shalt.err (!%p2582_p4)
}
   0xd   :  { %s2675_s21 = smov 512   ;;  %s2676_s22 = smov 32  }
   0xe   :  { %37 = dma.hbm_to_vmem [thread:$0]  %s2787_s1, 16384, %s32_s19, [#allocation7], %s2675_s21, %s2675_s21, %s2676_s22  }
   0xf   :  { %s2677_s25 = smov [#allocation3]  }
  0x10   :  { %s19_s26 = sshll.u32 %s2677_s25, 4  ;;  %s20_s26 = int_to_ptr.vmem [resolvable:$true] %s19_s26 }
  0x11   :  { %s2594_s27 = scalar_lea.vmem %s20_s26, 512  ;;  %p2599_p6 = scmp.lt.s32.totalorder %s20_s26, %s20_s26 }
  0x12   :  { %p2595_p5 = scmp.ne.s32.totalorder %s20_s26, %s2594_s27  ;;  %p2600_p7 = scmp.lt.s32.totalorder %s2594_s27, %s2594_s27 }
  0x14   :  { %p2601_p8 = por %p2600_p7, %p2599_p6 }
  0x16   :  { %p2602_p9 = pnand %p2601_p8, %p2595_p5 }
  0x18   :  { %2605 = shalt.err (!%p2602_p9)
}
  0x19   :  { %s2678_s28 = smov 256   ;;  %s2679_s29 = smov 16  }
  0x1a   :  { %25 = dma.hbm_to_vmem [thread:$0]  %s2786_s0, 512, %s20_s26, [#allocation4], %s2678_s28, %s2678_s28, %s2679_s29  }
  0x1b   :  { %s2680_s1 = smov [#allocation8]   ;;  %s2681_s8 = smov [#allocation9]  }
  0x1c   :  { %s44_s7 = sshll.u32 %s2680_s1, 4  ;;  %s53_s9 = sshll.u32 %s2681_s8, 4  ;;  %s45_s7 = int_to_ptr.vmem [resolvable:$true] %s44_s7  ;;  %s54_s9 = int_to_ptr.vmem [resolvable:$true] %s53_s9 }
  0x1d   :  { %s2614_s10 = scalar_lea.vmem %s45_s7, 128  ;;  %p2619_p11 = scmp.lt.s32.totalorder %s45_s7, %s45_s7 }
  0x1e   :  { %p2615_p10 = scmp.ne.s32.totalorder %s45_s7, %s2614_s10  ;;  %p2620_p12 = scmp.lt.s32.totalorder %s2614_s10, %s2614_s10 }
  0x20   :  { %p2621_p13 = por %p2620_p12, %p2619_p11 }
  0x22   :  { %p2622_p0 = pnand %p2621_p13, %p2615_p10 }
  0x24   :  { %2625 = shalt.err (!%p2622_p0)
}
  0x25   :  { %47 = dma.hbm_to_vmem [thread:$0]  %s2788_s2, 128, %s45_s7, [#allocation7]  }
  0x26   :  { %s2634_s13 = scalar_lea.vmem %s54_s9, 16384  ;;  %p2639_p2 = scmp.lt.s32.totalorder %s54_s9, %s54_s9 }
  0x27   :  { %p2635_p1 = scmp.ne.s32.totalorder %s54_s9, %s2634_s13  ;;  %p2640_p3 = scmp.lt.s32.totalorder %s2634_s13, %s2634_s13 }
  0x29   :  { %p2641_p4 = por %p2640_p3, %p2639_p2 }
  0x2b   :  { %p2642_p5 = pnand %p2641_p4, %p2635_p1 }
  0x2d   :  { %2645 = shalt.err (!%p2642_p5)
}
  0x2e   :  { %s2682_s0 = smov 128   ;;  %s2683_s14 = smov 8  }
  0x2f   :  { %59 = dma.hbm_to_vmem [thread:$0]  %s2789_s3, 16384, %s54_s9, [#allocation10], %s2682_s0, %s2682_s0, %s2683_s14  }
  0x30   :  { %2666 = dma.done.wait [#allocation4], 512  }
  0x31   :  { %2667 = vsyncadd [#allocation4], 4294966784 }
  0x32   :  { %2668 = dma.done.wait [#allocation7], 16512  }
  0x33   :  { %2669 = vsyncadd [#allocation7], 4294950784 }
  0x34   :  { %2670 = dma.done.wait [#allocation10], 16384  }
  0x35   :  { %2671 = vsyncadd [#allocation10], 4294950912  ;;  %v112_v0 = vld [vmem:[#allocation6 + $0x1c0] sm:$0xff]  ;;  %v113_v2 = vld [vmem:[#allocation6 + $0x1c8] sm:$0xff] }
  0x36   :  { %v114_v1 = vld [vmem:[#allocation6 + $0x1e0] sm:$0xff]  ;;  %v115_v4 = vld [vmem:[#allocation6 + $0x1e8] sm:$0xff]  ;;  %v77_v54 = vld [vmem:[#allocation3 + $0x18] sm:$0xff] }
  0x37   :  { %v2132_v3 = vcombine.high %v112_v0, %v114_v1  ;;  %v2131_v5 = vcombine.low %v112_v0, %v114_v1  ;;  %v108_v6 = vld [vmem:[#allocation6 + $0x180] sm:$0xff]  ;;  %v2134_v8 = vcombine.high %v113_v2, %v115_v4  ;;  %v2133_v9 = vcombine.low %v113_v2, %v115_v4  ;;  %v109_v11 = vld [vmem:[#allocation6 + $0x188] sm:$0xff] }
  0x38   :  { %v110_v7 = vld [vmem:[#allocation6 + $0x1a0] sm:$0xff]  ;;  %v111_v12 = vld [vmem:[#allocation6 + $0x1a8] sm:$0xff] }
  0x39   :  { %v2128_v10 = vcombine.high %v108_v6, %v110_v7  ;;  %v104_v13 = vld [vmem:[#allocation6 + $0x140] sm:$0xff]  ;;  %490 = vmatprep.subr.bf16.mxu0 %v2132_v3  ;;  %v2130_v14 = vcombine.high %v109_v11, %v111_v12  ;;  %v105_v16 = vld [vmem:[#allocation6 + $0x148] sm:$0xff]  ;;  %533 = vmatprep.subr.bf16.mxu1 %v2134_v8  ;;  %v2127_v18 = vcombine.low %v108_v6, %v110_v7 }
  0x3a   :  { %v106_v15 = vld [vmem:[#allocation6 + $0x160] sm:$0xff]  ;;  %v107_v17 = vld [vmem:[#allocation6 + $0x168] sm:$0xff]  ;;  %491 = vmatpush1.bf16.msra.mxu0 %v2131_v5  ;;  %534 = vmatpush1.bf16.msra.mxu1 %v2133_v9  ;;  %v2129_v19 = vcombine.low %v109_v11, %v111_v12 }
  0x3b   :  { %492 = vmatprep.subr.bf16.mxu0 %v2128_v10  ;;  %v2124_v20 = vcombine.high %v104_v13, %v106_v15  ;;  %535 = vmatprep.subr.bf16.mxu1 %v2130_v14  ;;  %v2126_v21 = vcombine.high %v105_v16, %v107_v17  ;;  %v100_v22 = vld [vmem:[#allocation6 + $0x100] sm:$0xff]  ;;  %v101_v24 = vld [vmem:[#allocation6 + $0x108] sm:$0xff]  ;;  %v2123_v26 = vcombine.low %v104_v13, %v106_v15 }
  0x3c   :  { %v102_v23 = vld [vmem:[#allocation6 + $0x120] sm:$0xff]  ;;  %v103_v25 = vld [vmem:[#allocation6 + $0x128] sm:$0xff]  ;;  %v2125_v27 = vcombine.low %v105_v16, %v107_v17 }
  0x3d   :  { %v2120_v28 = vcombine.high %v100_v22, %v102_v23  ;;  %v2122_v29 = vcombine.high %v101_v24, %v103_v25  ;;  %v96_v30 = vld [vmem:[#allocation6 + $0xc0] sm:$0xff]  ;;  %v97_v32 = vld [vmem:[#allocation6 + $0xc8] sm:$0xff]  ;;  %v2119_v34 = vcombine.low %v100_v22, %v102_v23  ;;  %v2121_v35 = vcombine.low %v101_v24, %v103_v25 }
  0x3e   :  { %493 = vmatpush1.bf16.msra.mxu0 %v2127_v18  ;;  %536 = vmatpush1.bf16.msra.mxu1 %v2129_v19  ;;  %v98_v31 = vld [vmem:[#allocation6 + $0xe0] sm:$0xff]  ;;  %v99_v33 = vld [vmem:[#allocation6 + $0xe8] sm:$0xff] }
  0x3f   :  { %494 = vmatprep.subr.bf16.mxu0 %v2124_v20  ;;  %537 = vmatprep.subr.bf16.mxu1 %v2126_v21  ;;  %v2116_v36 = vcombine.high %v96_v30, %v98_v31  ;;  %v2118_v37 = vcombine.high %v97_v32, %v99_v33  ;;  %v92_v38 = vld [vmem:[#allocation6 + $0x80] sm:$0xff]  ;;  %v93_v40 = vld [vmem:[#allocation6 + $0x88] sm:$0xff]  ;;  %v2115_v42 = vcombine.low %v96_v30, %v98_v31 }
  0x40   :  { %v94_v39 = vld [vmem:[#allocation6 + $0xa0] sm:$0xff]  ;;  %v95_v41 = vld [vmem:[#allocation6 + $0xa8] sm:$0xff]  ;;  %v2117_v43 = vcombine.low %v97_v32, %v99_v33 }
  0x41   :  { %v2112_v44 = vcombine.high %v92_v38, %v94_v39  ;;  %v2114_v45 = vcombine.high %v93_v40, %v95_v41  ;;  %v88_v46 = vld [vmem:[#allocation6 + $0x40] sm:$0xff]  ;;  %v89_v48 = vld [vmem:[#allocation6 + $0x48] sm:$0xff]  ;;  %v2111_v50 = vcombine.low %v92_v38, %v94_v39  ;;  %v2113_v51 = vcombine.low %v93_v40, %v95_v41 }
  0x42   :  { %495 = vmatpush1.bf16.msra.mxu0 %v2123_v26  ;;  %538 = vmatpush1.bf16.msra.mxu1 %v2125_v27  ;;  %v90_v47 = vld [vmem:[#allocation6 + $0x60] sm:$0xff]  ;;  %v91_v49 = vld [vmem:[#allocation6 + $0x68] sm:$0xff] }
  0x43   :  { %496 = vmatprep.subr.bf16.mxu0 %v2120_v28  ;;  %539 = vmatprep.subr.bf16.mxu1 %v2122_v29  ;;  %v2108_v52 = vcombine.high %v88_v46, %v90_v47  ;;  %v75_v53 = vld [vmem:[#allocation3 + $0x8] sm:$0xff]  ;;  %v2110_v55 = vcombine.high %v89_v48, %v91_v49  ;;  %v84_v56 = vld [vmem:[#allocation6] sm:$0xff]  ;;  %v2107_v61 = vcombine.low %v88_v46, %v90_v47 }
  0x44   :  { %v86_v57 = vld [vmem:[#allocation6 + $0x20] sm:$0xff]  ;;  %v2730_v58 = vpack.c.bf16 %v77_v54, %v75_v53  ;;  %v85_v59 = vld [vmem:[#allocation6 + $0x8] sm:$0xff]  ;;  %v2109_v62 = vcombine.low %v89_v48, %v91_v49 }
  0x45   :  { %v87_v60 = vld [vmem:[#allocation6 + $0x28] sm:$0xff]  ;;  %v2104_v63 = vcombine.high %v84_v56, %v86_v57  ;;  %v144_v1 = vld [vmem:[#allocation6 + $0x3c0] sm:$0xff]  ;;  %v2103_v5 = vcombine.low %v84_v56, %v86_v57 }
  0x46   :  { %497 = vmatpush1.bf16.msra.mxu0 %v2119_v34  ;;  %540 = vmatpush1.bf16.msra.mxu1 %v2121_v35  ;;  %v2106_v0 = vcombine.high %v85_v59, %v87_v60  ;;  %v146_v2 = vld [vmem:[#allocation6 + $0x3e0] sm:$0xff]  ;;  %v145_v3 = vld [vmem:[#allocation6 + $0x3c8] sm:$0xff]  ;;  %v2105_v6 = vcombine.low %v85_v59, %v87_v60 }
  0x47   :  { %498 = vmatprep.subr.bf16.mxu0 %v2116_v36  ;;  %541 = vmatprep.subr.bf16.mxu1 %v2118_v37  ;;  %v147_v4 = vld [vmem:[#allocation6 + $0x3e8] sm:$0xff]  ;;  %v2164_v7 = vcombine.high %v144_v1, %v146_v2  ;;  %v140_v9 = vld [vmem:[#allocation6 + $0x380] sm:$0xff]  ;;  %v2163_v13 = vcombine.low %v144_v1, %v146_v2 }
  0x48   :  { %522 = vmatprep.mubr.bf16.mxu0 %v2730_v58  ;;  %565 = vmatprep.mubr.bf16.mxu1 %v2730_v58  ;;  %v2166_v8 = vcombine.high %v145_v3, %v147_v4  ;;  %v142_v10 = vld [vmem:[#allocation6 + $0x3a0] sm:$0xff]  ;;  %v141_v11 = vld [vmem:[#allocation6 + $0x388] sm:$0xff]  ;;  %v2165_v14 = vcombine.low %v145_v3, %v147_v4  ;;  %v76_v3 = vld [vmem:[#allocation3 + $0x10] sm:$0xff] }
  0x49   :  { %v143_v12 = vld [vmem:[#allocation6 + $0x3a8] sm:$0xff]  ;;  %v2160_v15 = vcombine.high %v140_v9, %v142_v10  ;;  %v136_v17 = vld [vmem:[#allocation6 + $0x340] sm:$0xff]  ;;  %v2159_v21 = vcombine.low %v140_v9, %v142_v10 }
  0x4a   :  { %499 = vmatpush1.bf16.msra.mxu0 %v2115_v42  ;;  %542 = vmatpush1.bf16.msra.mxu1 %v2117_v43  ;;  %v2162_v16 = vcombine.high %v141_v11, %v143_v12  ;;  %v138_v18 = vld [vmem:[#allocation6 + $0x360] sm:$0xff]  ;;  %v137_v19 = vld [vmem:[#allocation6 + $0x348] sm:$0xff]  ;;  %v2161_v22 = vcombine.low %v141_v11, %v143_v12 }
  0x4b   :  { %500 = vmatprep.subr.bf16.mxu0 %v2112_v44  ;;  %543 = vmatprep.subr.bf16.mxu1 %v2114_v45  ;;  %v139_v20 = vld [vmem:[#allocation6 + $0x368] sm:$0xff]  ;;  %v2156_v23 = vcombine.high %v136_v17, %v138_v18  ;;  %v132_v25 = vld [vmem:[#allocation6 + $0x300] sm:$0xff]  ;;  %v2155_v29 = vcombine.low %v136_v17, %v138_v18 }
  0x4c   :  { %v2158_v24 = vcombine.high %v137_v19, %v139_v20  ;;  %v134_v26 = vld [vmem:[#allocation6 + $0x320] sm:$0xff]  ;;  %v133_v27 = vld [vmem:[#allocation6 + $0x308] sm:$0xff]  ;;  %v2157_v30 = vcombine.low %v137_v19, %v139_v20 }
  0x4d   :  { %v135_v28 = vld [vmem:[#allocation6 + $0x328] sm:$0xff]  ;;  %v2152_v31 = vcombine.high %v132_v25, %v134_v26  ;;  %v128_v33 = vld [vmem:[#allocation6 + $0x2c0] sm:$0xff]  ;;  %v2151_v37 = vcombine.low %v132_v25, %v134_v26 }
  0x4e   :  { %501 = vmatpush1.bf16.msra.mxu0 %v2111_v50  ;;  %544 = vmatpush1.bf16.msra.mxu1 %v2113_v51  ;;  %v2154_v32 = vcombine.high %v133_v27, %v135_v28  ;;  %v130_v34 = vld [vmem:[#allocation6 + $0x2e0] sm:$0xff]  ;;  %v129_v35 = vld [vmem:[#allocation6 + $0x2c8] sm:$0xff]  ;;  %v2153_v38 = vcombine.low %v133_v27, %v135_v28 }
  0x4f   :  { %502 = vmatprep.subr.bf16.mxu0 %v2108_v52  ;;  %545 = vmatprep.subr.bf16.mxu1 %v2110_v55  ;;  %v131_v36 = vld [vmem:[#allocation6 + $0x2e8] sm:$0xff]  ;;  %v2148_v39 = vcombine.high %v128_v33, %v130_v34  ;;  %v124_v41 = vld [vmem:[#allocation6 + $0x280] sm:$0xff]  ;;  %v2147_v45 = vcombine.low %v128_v33, %v130_v34 }
  0x50   :  { %v2150_v40 = vcombine.high %v129_v35, %v131_v36  ;;  %v126_v42 = vld [vmem:[#allocation6 + $0x2a0] sm:$0xff]  ;;  %v125_v43 = vld [vmem:[#allocation6 + $0x288] sm:$0xff]  ;;  %v2149_v46 = vcombine.low %v129_v35, %v131_v36 }
  0x51   :  { %v127_v44 = vld [vmem:[#allocation6 + $0x2a8] sm:$0xff]  ;;  %v2144_v47 = vcombine.high %v124_v41, %v126_v42  ;;  %v120_v49 = vld [vmem:[#allocation6 + $0x240] sm:$0xff]  ;;  %v2143_v53 = vcombine.low %v124_v41, %v126_v42 }
  0x52   :  { %503 = vmatpush1.bf16.msra.mxu0 %v2107_v61  ;;  %546 = vmatpush1.bf16.msra.mxu1 %v2109_v62  ;;  %v2146_v48 = vcombine.high %v125_v43, %v127_v44  ;;  %v122_v50 = vld [vmem:[#allocation6 + $0x260] sm:$0xff]  ;;  %v121_v51 = vld [vmem:[#allocation6 + $0x248] sm:$0xff]  ;;  %v2145_v54 = vcombine.low %v125_v43, %v127_v44 }
  0x53   :  { %504 = vmatprep.subr.bf16.mxu0 %v2104_v63  ;;  %547 = vmatprep.subr.bf16.mxu1 %v2106_v0  ;;  %v123_v52 = vld [vmem:[#allocation6 + $0x268] sm:$0xff]  ;;  %v2140_v55 = vcombine.high %v120_v49, %v122_v50  ;;  %v116_v57 = vld [vmem:[#allocation6 + $0x200] sm:$0xff]  ;;  %v2139_v62 = vcombine.low %v120_v49, %v122_v50 }
  0x54   :  { %v2142_v56 = vcombine.high %v121_v51, %v123_v52  ;;  %v118_v59 = vld [vmem:[#allocation6 + $0x220] sm:$0xff]  ;;  %v117_v60 = vld [vmem:[#allocation6 + $0x208] sm:$0xff]  ;;  %v2141_v63 = vcombine.low %v121_v51, %v123_v52 }
  0x55   :  { %v119_v61 = vld [vmem:[#allocation6 + $0x228] sm:$0xff]  ;;  %v2136_v0 = vcombine.high %v116_v57, %v118_v59  ;;  %v74_v2 = vld [vmem:[#allocation3] sm:$0xff] }
  0x56   :  { %505 = vmatpush1.bf16.msra.mxu0 %v2103_v5  ;;  %548 = vmatpush1.bf16.msra.mxu1 %v2105_v6  ;;  %v2138_v1 = vcombine.high %v117_v60, %v119_v61  ;;  %v2372_v4 = vld [vmem:[#allocation9 + $0x74] ss:$8 sps:$4 sm:$0xff]   ;;  %v2135_v5 = vcombine.low %v116_v57, %v118_v59  ;;  %v2734_v9 = vpack.c.bf16 %v76_v3, %v74_v2  ;;  %v2373_v10 = vld [vmem:[#allocation9 + $0x170] ss:$8 sps:$4 sm:$0xff]   ;;  %v2378_v11 = vld [vmem:[#allocation9 + $0x64] ss:$8 sps:$4 sm:$0xff]  }
  0x57   :  { %506 = vmatprep.subr.bf16.mxu0 %v2164_v7  ;;  %549 = vmatprep.subr.bf16.mxu1 %v2166_v8  ;;  %v2375_v6 = vld [vmem:[#allocation9 + $0x174] ss:$8 sps:$4 sm:$0xff]   ;;  %v2137_v7 = vcombine.low %v117_v60, %v119_v61  ;;  %v2370_v8 = vld [vmem:[#allocation9 + $0x70] ss:$8 sps:$4 sm:$0xff]   ;;  %v2381_v12 = vld [vmem:[#allocation9 + $0x164] ss:$8 sps:$4 sm:$0xff]  }
  0x58   :  { %v2382_v17 = vld [vmem:[#allocation9 + $0x50] ss:$8 sps:$4 sm:$0xff]   ;;  %v2390_v19 = vld [vmem:[#allocation9 + $0x44] ss:$8 sps:$4 sm:$0xff]  }
  0x59   :  { %v2385_v18 = vld [vmem:[#allocation9 + $0x150] ss:$8 sps:$4 sm:$0xff]   ;;  %v2393_v20 = vld [vmem:[#allocation9 + $0x144] ss:$8 sps:$4 sm:$0xff]  }
  0x5a   :  { %507 = vmatpush2.bf16.msra.mxu0 %v2163_v13  ;;  %550 = vmatpush2.bf16.msra.mxu1 %v2165_v14  ;;  %v2376_v13 = vld [vmem:[#allocation9 + $0x60] ss:$8 sps:$4 sm:$0xff]   ;;  %v2394_v25 = vld [vmem:[#allocation9 + $0x30] ss:$8 sps:$4 sm:$0xff]   ;;  %v2402_v27 = vld [vmem:[#allocation9 + $0x24] ss:$8 sps:$4 sm:$0xff]  }
  0x5b   :  { %508 = vmatprep.subr.bf16.mxu0 %v2160_v15  ;;  %551 = vmatprep.subr.bf16.mxu1 %v2162_v16  ;;  %v2379_v14 = vld [vmem:[#allocation9 + $0x160] ss:$8 sps:$4 sm:$0xff]   ;;  %v2384_v15 = vld [vmem:[#allocation9 + $0x54] ss:$8 sps:$4 sm:$0xff]   ;;  %v2397_v26 = vld [vmem:[#allocation9 + $0x130] ss:$8 sps:$4 sm:$0xff]  }
  0x5c   :  { %v2387_v16 = vld [vmem:[#allocation9 + $0x154] ss:$8 sps:$4 sm:$0xff]   ;;  %v2405_v28 = vld [vmem:[#allocation9 + $0x124] ss:$8 sps:$4 sm:$0xff]   ;;  %v2406_v33 = vld [vmem:[#allocation9 + $0x10] ss:$8 sps:$4 sm:$0xff]  }
  0x5d   :  { %v2409_v34 = vld [vmem:[#allocation9 + $0x110] ss:$8 sps:$4 sm:$0xff]   ;;  %v2414_v35 = vld [vmem:[#allocation9 + $0x4] ss:$8 sps:$4 sm:$0xff]  }
  0x5e   :  { %509 = vmatpush2.bf16.msra.mxu0 %v2159_v21  ;;  %552 = vmatpush2.bf16.msra.mxu1 %v2161_v22  ;;  %v2388_v21 = vld [vmem:[#allocation9 + $0x40] ss:$8 sps:$4 sm:$0xff]   ;;  %v2417_v36 = vld [vmem:[#allocation9 + $0x104] ss:$8 sps:$4 sm:$0xff]   ;;  %v2418_v41 = vld [vmem:[#allocation9 + $0xf0] ss:$8 sps:$4 sm:$0xff]  }
  0x5f   :  { %510 = vmatprep.subr.bf16.mxu0 %v2156_v23  ;;  %553 = vmatprep.subr.bf16.mxu1 %v2158_v24  ;;  %v2391_v22 = vld [vmem:[#allocation9 + $0x140] ss:$8 sps:$4 sm:$0xff]   ;;  %v2396_v23 = vld [vmem:[#allocation9 + $0x34] ss:$8 sps:$4 sm:$0xff]   ;;  %v2421_v42 = vld [vmem:[#allocation9 + $0x1f0] ss:$8 sps:$4 sm:$0xff]  }
  0x60   :  { %v2399_v24 = vld [vmem:[#allocation9 + $0x134] ss:$8 sps:$4 sm:$0xff]   ;;  %v2426_v43 = vld [vmem:[#allocation9 + $0xe4] ss:$8 sps:$4 sm:$0xff]   ;;  %v2430_v49 = vld [vmem:[#allocation9 + $0xd0] ss:$8 sps:$4 sm:$0xff]  }
  0x61   :  { %v2429_v44 = vld [vmem:[#allocation9 + $0x1e4] ss:$8 sps:$4 sm:$0xff]   ;;  %v2433_v50 = vld [vmem:[#allocation9 + $0x1d0] ss:$8 sps:$4 sm:$0xff]  }
  0x62   :  { %511 = vmatpush2.bf16.msra.mxu0 %v2155_v29  ;;  %554 = vmatpush2.bf16.msra.mxu1 %v2157_v30  ;;  %v2400_v29 = vld [vmem:[#allocation9 + $0x20] ss:$8 sps:$4 sm:$0xff]   ;;  %v2438_v51 = vld [vmem:[#allocation9 + $0xc4] ss:$8 sps:$4 sm:$0xff]   ;;  %v2442_v57 = vld [vmem:[#allocation9 + $0xb0] ss:$8 sps:$4 sm:$0xff]  }
  0x63   :  { %512 = vmatprep.subr.bf16.mxu0 %v2152_v31  ;;  %555 = vmatprep.subr.bf16.mxu1 %v2154_v32  ;;  %v2403_v30 = vld [vmem:[#allocation9 + $0x120] ss:$8 sps:$4 sm:$0xff]   ;;  %v2408_v31 = vld [vmem:[#allocation9 + $0x14] ss:$8 sps:$4 sm:$0xff]   ;;  %v2441_v52 = vld [vmem:[#allocation9 + $0x1c4] ss:$8 sps:$4 sm:$0xff]  }
  0x64   :  { %v2411_v32 = vld [vmem:[#allocation9 + $0x114] ss:$8 sps:$4 sm:$0xff]   ;;  %v2445_v59 = vld [vmem:[#allocation9 + $0x1b0] ss:$8 sps:$4 sm:$0xff]   ;;  %v2450_v60 = vld [vmem:[#allocation9 + $0xa4] ss:$8 sps:$4 sm:$0xff]  }
  0x65   :  { %v2453_v61 = vld [vmem:[#allocation9 + $0x1a4] ss:$8 sps:$4 sm:$0xff]   ;;  %v2454_v2 = vld [vmem:[#allocation9 + $0x90] ss:$8 sps:$4 sm:$0xff]  }
  0x66   :  { %513 = vmatpush2.bf16.msra.mxu0 %v2151_v37  ;;  %556 = vmatpush2.bf16.msra.mxu1 %v2153_v38  ;;  %v2412_v37 = vld [vmem:[#allocation9] ss:$8 sps:$4 sm:$0xff]   ;;  %v2457_v3 = vld [vmem:[#allocation9 + $0x190] ss:$8 sps:$4 sm:$0xff]  }
  0x67   :  { %514 = vmatprep.subr.bf16.mxu0 %v2148_v39  ;;  %557 = vmatprep.subr.bf16.mxu1 %v2150_v40  ;;  %v2415_v38 = vld [vmem:[#allocation9 + $0x100] ss:$8 sps:$4 sm:$0xff]   ;;  %v2420_v39 = vld [vmem:[#allocation9 + $0xf4] ss:$8 sps:$4 sm:$0xff]  }
  0x68   :  { %v2423_v40 = vld [vmem:[#allocation9 + $0x1f4] ss:$8 sps:$4 sm:$0xff]  }
  0x6a   :  { %515 = vmatpush2.bf16.msra.mxu0 %v2147_v45  ;;  %558 = vmatpush2.bf16.msra.mxu1 %v2149_v46  ;;  %v2424_v45 = vld [vmem:[#allocation9 + $0xe0] ss:$8 sps:$4 sm:$0xff]  }
  0x6b   :  { %516 = vmatprep.subr.bf16.mxu0 %v2144_v47  ;;  %559 = vmatprep.subr.bf16.mxu1 %v2146_v48  ;;  %v2427_v46 = vld [vmem:[#allocation9 + $0x1e0] ss:$8 sps:$4 sm:$0xff]   ;;  %v2432_v47 = vld [vmem:[#allocation9 + $0xd4] ss:$8 sps:$4 sm:$0xff]  }
  0x6c   :  { %v2435_v48 = vld [vmem:[#allocation9 + $0x1d4] ss:$8 sps:$4 sm:$0xff]  }
  0x6e   :  { %517 = vmatpush2.bf16.msra.mxu0 %v2143_v53  ;;  %560 = vmatpush2.bf16.msra.mxu1 %v2145_v54  ;;  %v2436_v53 = vld [vmem:[#allocation9 + $0xc0] ss:$8 sps:$4 sm:$0xff]  }
  0x6f   :  { %518 = vmatprep.subr.bf16.mxu0 %v2140_v55  ;;  %561 = vmatprep.subr.bf16.mxu1 %v2142_v56  ;;  %v2439_v54 = vld [vmem:[#allocation9 + $0x1c0] ss:$8 sps:$4 sm:$0xff]   ;;  %v2444_v55 = vld [vmem:[#allocation9 + $0xb4] ss:$8 sps:$4 sm:$0xff]  }
  0x70   :  { %v2447_v56 = vld [vmem:[#allocation9 + $0x1b4] ss:$8 sps:$4 sm:$0xff]  }
  0x72   :  { %519 = vmatpush2.bf16.msra.mxu0 %v2139_v62  ;;  %562 = vmatpush2.bf16.msra.mxu1 %v2141_v63  ;;  %v2448_v62 = vld [vmem:[#allocation9 + $0xa0] ss:$8 sps:$4 sm:$0xff]  }
  0x73   :  { %520 = vmatprep.subr.bf16.mxu0 %v2136_v0  ;;  %563 = vmatprep.subr.bf16.mxu1 %v2138_v1  ;;  %v2451_v63 = vld [vmem:[#allocation9 + $0x1a0] ss:$8 sps:$4 sm:$0xff]   ;;  %v2456_v0 = vld [vmem:[#allocation9 + $0x94] ss:$8 sps:$4 sm:$0xff]  }
  0x74   :  { %v2459_v1 = vld [vmem:[#allocation9 + $0x194] ss:$8 sps:$4 sm:$0xff]  }
  0x76   :  { %521 = vmatpush2.bf16.msra.mxu0 %v2135_v5  ;;  %564 = vmatpush2.bf16.msra.mxu1 %v2137_v7  ;;  %v2465_v5 = vld [vmem:[#allocation9 + $0x184] ss:$8 sps:$4 sm:$0xff]   ;;  %v2463_v7 = vld [vmem:[#allocation9 + $0x180] ss:$8 sps:$4 sm:$0xff]  }
  0x77   :  { %976 = vmatprep.subr.bf16.mxu0 %v2372_v4  ;;  %1019 = vmatprep.subr.bf16.mxu1 %v2375_v6  ;;  %v2462_v4 = vld [vmem:[#allocation9 + $0x84] ss:$8 sps:$4 sm:$0xff]   ;;  %v2460_v6 = vld [vmem:[#allocation9 + $0x80] ss:$8 sps:$4 sm:$0xff]  }
  0x79   :  { %523 = vmatmul.mubr.bf16.vlgmr.msra.gmra.mxu0 %v2734_v9  ;;  %566 = vmatmul.mubr.bf16.vlgmr.msra.gmra.mxu1 %v2734_v9 }
  0x7a   :  { %977 = vmatpush1.bf16.msra.mxu0 %v2370_v8  ;;  %1020 = vmatpush1.bf16.msra.mxu1 %v2373_v10  ;;  %v2738_v8 = vld [vmem:[#allocation6 + $0x1d0] sm:$0xff] }
  0x7b   :  { %978 = vmatprep.subr.bf16.mxu0 %v2378_v11  ;;  %1021 = vmatprep.subr.bf16.mxu1 %v2381_v12  ;;  %v1100_v10 = vld [vmem:[#allocation6 + $0x1f0] sm:$0xff]  ;;  %v2740_v11 = vld [vmem:[#allocation6 + $0x1d8] sm:$0xff] }
  0x7c   :  { %v2260_v12 = vcombine.high %v2738_v8, %v1100_v10 }
  0x7e   :  { %979 = vmatpush1.bf16.msra.mxu0 %v2376_v13  ;;  %1022 = vmatpush1.bf16.msra.mxu1 %v2379_v14  ;;  %v1101_v13 = vld [vmem:[#allocation6 + $0x1f8] sm:$0xff]  ;;  %v2259_v14 = vcombine.low %v2738_v8, %v1100_v10  ;;  %v1088_v8 = vld [vmem:[#allocation6 + $0x130] sm:$0xff] }
  0x7f   :  { %980 = vmatprep.subr.bf16.mxu0 %v2384_v15  ;;  %1023 = vmatprep.subr.bf16.mxu1 %v2387_v16  ;;  %v2261_v15 = vcombine.low %v2740_v11, %v1101_v13  ;;  %v2262_v16 = vcombine.high %v2740_v11, %v1101_v13  ;;  %v1087_v10 = vld [vmem:[#allocation6 + $0x118] sm:$0xff] }
  0x80   :  { %v1089_v11 = vld [vmem:[#allocation6 + $0x138] sm:$0xff] }
  0x82   :  { %981 = vmatpush1.bf16.msra.mxu0 %v2382_v17  ;;  %1024 = vmatpush1.bf16.msra.mxu1 %v2385_v18  ;;  %v150_v17 = vlaneseq }
  0x83   :  { %982 = vmatprep.subr.bf16.mxu0 %v2390_v19  ;;  %1025 = vmatprep.subr.bf16.mxu1 %v2393_v20 }
  0x84   :  { %v2746_v18 = vshrl.u32 %v150_v17, 7  ;;  %v1084_v17 = vld [vmem:[#allocation6 + $0xf0] sm:$0xff] }
  0x86   :  { %983 = vmatpush1.bf16.msra.mxu0 %v2388_v21  ;;  %1026 = vmatpush1.bf16.msra.mxu1 %v2391_v22  ;;  %v2749_v19 = vsub.s32 1, %v2746_v18  ;;  %v2752_v20 = vsub.s32 0, %v2746_v18  ;;  %v164_v21 = vsub.s32 3, %v2746_v18  ;;  %v148_v22 = vld [vmem:[#allocation8] sm:$0xf] }
  0x87   :  { %984 = vmatprep.subr.bf16.mxu0 %v2396_v23  ;;  %1027 = vmatprep.subr.bf16.mxu1 %v2399_v24  ;;  %v160_v23 = vsub.s32 2, %v2746_v18 }
  0x8a   :  { %985 = vmatpush1.bf16.msra.mxu0 %v2394_v25  ;;  %1028 = vmatpush1.bf16.msra.mxu1 %v2397_v26  ;;  %v157_v26 = vrot.slane %v148_v22, %v2749_v19 }
  0x8b   :  { %986 = vmatprep.subr.bf16.mxu0 %v2402_v27  ;;  %1029 = vmatprep.subr.bf16.mxu1 %v2405_v28  ;;  %v153_v27 = vrot.slane %v148_v22, %v2752_v20 }
  0x8e   :  { %987 = vmatpush1.bf16.msra.mxu0 %v2400_v29  ;;  %1030 = vmatpush1.bf16.msra.mxu1 %v2403_v30  ;;  %v165_v29 = vrot.slane %v148_v22, %v164_v21  ;;  %v161_v30 = vrot.slane %v148_v22, %v160_v23  ;;  %v1083_v22 = vld [vmem:[#allocation6 + $0xd8] sm:$0xff] }
  0x8f   :  { %988 = vmatprep.subr.bf16.mxu0 %v2408_v31  ;;  %1031 = vmatprep.subr.bf16.mxu1 %v2411_v32 }
  0x92   :  { %989 = vmatpush1.bf16.msra.mxu0 %v2406_v33  ;;  %1032 = vmatpush1.bf16.msra.mxu1 %v2409_v34 }
  0x93   :  { %990 = vmatprep.subr.bf16.mxu0 %v2414_v35  ;;  %1033 = vmatprep.subr.bf16.mxu1 %v2417_v36 }
  0x96   :  { %991 = vmatpush1.bf16.msra.mxu0 %v2412_v37  ;;  %1034 = vmatpush1.bf16.msra.mxu1 %v2415_v38 }
  0x97   :  { %992 = vmatprep.subr.bf16.mxu0 %v2420_v39  ;;  %1035 = vmatprep.subr.bf16.mxu1 %v2423_v40 }
  0x9a   :  { %993 = vmatpush2.bf16.msra.mxu0 %v2418_v41  ;;  %1036 = vmatpush2.bf16.msra.mxu1 %v2421_v42 }
  0x9b   :  { %994 = vmatprep.subr.bf16.mxu0 %v2426_v43  ;;  %1037 = vmatprep.subr.bf16.mxu1 %v2429_v44 }
  0x9e   :  { %995 = vmatpush2.bf16.msra.mxu0 %v2424_v45  ;;  %1038 = vmatpush2.bf16.msra.mxu1 %v2427_v46 }
  0x9f   :  { %996 = vmatprep.subr.bf16.mxu0 %v2432_v47  ;;  %1039 = vmatprep.subr.bf16.mxu1 %v2435_v48  ;;  %v1094_v48 = vld [vmem:[#allocation6 + $0x190] sm:$0xff] }
  0xa2   :  { %997 = vmatpush2.bf16.msra.mxu0 %v2430_v49  ;;  %1040 = vmatpush2.bf16.msra.mxu1 %v2433_v50  ;;  %v1096_v49 = vld [vmem:[#allocation6 + $0x1b0] sm:$0xff] }
  0xa3   :  { %998 = vmatprep.subr.bf16.mxu0 %v2438_v51  ;;  %1041 = vmatprep.subr.bf16.mxu1 %v2441_v52 }
  0xa6   :  { %999 = vmatpush2.bf16.msra.mxu0 %v2436_v53  ;;  %1042 = vmatpush2.bf16.msra.mxu1 %v2439_v54  ;;  %v1095_v53 = vld [vmem:[#allocation6 + $0x198] sm:$0xff] }
  0xa7   :  { %1000 = vmatprep.subr.bf16.mxu0 %v2444_v55  ;;  %1043 = vmatprep.subr.bf16.mxu1 %v2447_v56  ;;  %v1097_v54 = vld [vmem:[#allocation6 + $0x1b8] sm:$0xff] }
  0xaa   :  { %1001 = vmatpush2.bf16.msra.mxu0 %v2442_v57  ;;  %1044 = vmatpush2.bf16.msra.mxu1 %v2445_v59 }
  0xab   :  { %1002 = vmatprep.subr.bf16.mxu0 %v2450_v60  ;;  %1045 = vmatprep.subr.bf16.mxu1 %v2453_v61  ;;  %v2256_v60 = vcombine.high %v1094_v48, %v1096_v49 }
  0xae   :  { %1003 = vmatpush2.bf16.msra.mxu0 %v2448_v62  ;;  %1046 = vmatpush2.bf16.msra.mxu1 %v2451_v63  ;;  %v2258_v62 = vcombine.high %v1095_v53, %v1097_v54  ;;  %v1090_v63 = vld [vmem:[#allocation6 + $0x150] sm:$0xff] }
  0xaf   :  { %1004 = vmatprep.subr.bf16.mxu0 %v2456_v0  ;;  %1047 = vmatprep.subr.bf16.mxu1 %v2459_v1  ;;  %v1092_v0 = vld [vmem:[#allocation6 + $0x170] sm:$0xff]  ;;  %v1091_v1 = vld [vmem:[#allocation6 + $0x158] sm:$0xff] }
  0xb2   :  { %1005 = vmatpush2.bf16.msra.mxu0 %v2454_v2  ;;  %1048 = vmatpush2.bf16.msra.mxu1 %v2457_v3  ;;  %v1093_v2 = vld [vmem:[#allocation6 + $0x178] sm:$0xff]  ;;  %v2255_v3 = vcombine.low %v1094_v48, %v1096_v49 }
  0xb3   :  { %1006 = vmatprep.subr.bf16.mxu0 %v2462_v4  ;;  %1049 = vmatprep.subr.bf16.mxu1 %v2465_v5  ;;  %v2257_v4 = vcombine.low %v1095_v53, %v1097_v54  ;;  %v2252_v5 = vcombine.high %v1090_v63, %v1092_v0  ;;  %v2253_v13 = vcombine.low %v1091_v1, %v1093_v2  ;;  %v1132_v53 = vld [vmem:[#allocation6 + $0x3f0] sm:$0xff]  ;;  %v1131_v54 = vld [vmem:[#allocation6 + $0x3d8] sm:$0xff] }
  0xb6   :  { %1007 = vmatpush2.bf16.msra.mxu0 %v2460_v6  ;;  %1050 = vmatpush2.bf16.msra.mxu1 %v2463_v7  ;;  %v2254_v6 = vcombine.high %v1091_v1, %v1093_v2  ;;  %v1086_v7 = vld [vmem:[#allocation6 + $0x110] sm:$0xff] }
  0xb7   :  { %1476 = vmatprep.subr.bf16.mxu0 %v2260_v12  ;;  %1519 = vmatprep.subr.bf16.mxu1 %v2262_v16  ;;  %v2251_v12 = vcombine.low %v1090_v63, %v1092_v0  ;;  %v1082_v16 = vld [vmem:[#allocation6 + $0xd0] sm:$0xff]  ;;  %v1127_v63 = vld [vmem:[#allocation6 + $0x398] sm:$0xff] }
  0xb8   :  { %v1129_v0 = vld [vmem:[#allocation6 + $0x3b8] sm:$0xff] }
 0x139   :  { %v524_v24 = vpop.f32.mrf.mxu0  ;;  %v567_v25 = vpop.f32.mrf.mxu1 }
 0x13a   :  { %v525_v36 = vadd.f32 %v524_v24, %v153_v27  ;;  %v568_v40 = vadd.f32 %v567_v25, %v161_v30  ;;  %v1085_v24 = vld [vmem:[#allocation6 + $0xf8] sm:$0xff]  ;;  %v2247_v25 = vcombine.low %v1086_v7, %v1088_v8 }
 0x13b   :  { %v526_v28 = vpop.f32.mrf.mxu0  ;;  %v569_v31 = vpop.f32.mrf.mxu1 }
 0x13c   :  { %v527_v33 = vadd.f32 %v526_v28, %v157_v26  ;;  %v570_v37 = vadd.f32 %v569_v31, %v165_v29  ;;  %v576_v50 = vmax.f32 %v525_v36, 0.0  ;;  %v578_v55 = vmax.f32 %v568_v40, 0.0  ;;  %v1078_v28 = vld [vmem:[#allocation6 + $0x90] sm:$0xff]  ;;  %v1081_v31 = vld [vmem:[#allocation6 + $0xb8] sm:$0xff] }
 0x13d   :  { %v528_v32 = vpop.f32.mrf.mxu0  ;;  %v571_v35 = vpop.f32.mrf.mxu1  ;;  %v1074_v36 = vld [vmem:[#allocation6 + $0x50] sm:$0xff] }
 0x13e   :  { %v529_v34 = vadd.f32 %v528_v32, %v153_v27  ;;  %v572_v38 = vadd.f32 %v571_v35, %v161_v30  ;;  %v577_v45 = vmax.f32 %v527_v33, 0.0  ;;  %v579_v51 = vmax.f32 %v570_v37, 0.0  ;;  %v1079_v30 = vld [vmem:[#allocation6 + $0x98] sm:$0xff]  ;;  %v1076_v37 = vld [vmem:[#allocation6 + $0x70] sm:$0xff] }
 0x13f   :  { %v530_v39 = vpop.f32.mrf.mxu0  ;;  %v573_v42 = vpop.f32.mrf.mxu1  ;;  %v2244_v27 = vcombine.high %v1082_v16, %v1084_v17  ;;  %v2243_v32 = vcombine.low %v1082_v16, %v1084_v17  ;;  %v2245_v33 = vcombine.low %v1083_v22, %v1085_v24  ;;  %v2242_v35 = vcombine.high %v1079_v30, %v1081_v31  ;;  %v1119_v16 = vld [vmem:[#allocation6 + $0x318] sm:$0xff] }
 0x140   :  { %v531_v41 = vadd.f32 %v530_v39, %v157_v26  ;;  %v580_v43 = vmax.f32 %v529_v34, 0.0  ;;  %v574_v44 = vadd.f32 %v573_v42, %v165_v29  ;;  %v582_v46 = vmax.f32 %v572_v38, 0.0  ;;  %v1080_v29 = vld [vmem:[#allocation6 + $0xb0] sm:$0xff]  ;;  %v1075_v38 = vld [vmem:[#allocation6 + $0x58] sm:$0xff] }
 0x141   :  { %v2249_v26 = vcombine.low %v1087_v10, %v1089_v11  ;;  %v2240_v34 = vcombine.high %v1078_v28, %v1080_v29  ;;  %v1077_v39 = vld [vmem:[#allocation6 + $0x78] sm:$0xff]  ;;  %v2239_v40 = vcombine.low %v1078_v28, %v1080_v29  ;;  %v2236_v42 = vcombine.high %v1074_v36, %v1076_v37 }
 0x142   :  { %v581_v47 = vmax.f32 %v531_v41, 0.0  ;;  %v583_v52 = vmax.f32 %v574_v44, 0.0  ;;  %v588_v57 = vpack.c.bf16 %v580_v43, %v576_v50  ;;  %v590_v61 = vpack.c.bf16 %v582_v46, %v578_v55  ;;  %v1070_v44 = vld [vmem:[#allocation6 + $0x10] sm:$0xff]  ;;  %v1071_v46 = vld [vmem:[#allocation6 + $0x18] sm:$0xff] }
 0x143   :  { %v2241_v41 = vcombine.low %v1079_v30, %v1081_v31  ;;  %v2238_v43 = vcombine.high %v1075_v38, %v1077_v39  ;;  %v2235_v48 = vcombine.low %v1074_v36, %v1076_v37  ;;  %v2237_v49 = vcombine.low %v1075_v38, %v1077_v39  ;;  %v1133_v55 = vld [vmem:[#allocation6 + $0x3f8] sm:$0xff] }
 0x144   :  { %v589_v56 = vpack.c.bf16 %v581_v47, %v577_v45  ;;  %v591_v59 = vpack.c.bf16 %v583_v52, %v579_v51  ;;  %v1072_v45 = vld [vmem:[#allocation6 + $0x30] sm:$0xff]  ;;  %v1073_v47 = vld [vmem:[#allocation6 + $0x38] sm:$0xff]  ;;  %v2293_v2 = vcombine.low %v1131_v54, %v1133_v55 }
 0x145   :  { %v2232_v50 = vcombine.high %v1070_v44, %v1072_v45  ;;  %v2234_v51 = vcombine.high %v1071_v46, %v1073_v47  ;;  %v1130_v52 = vld [vmem:[#allocation6 + $0x3d0] sm:$0xff]  ;;  %v1121_v17 = vld [vmem:[#allocation6 + $0x338] sm:$0xff] }
 0x146   :  { %1008 = vmatprep.mubr.bf16.mxu0 %v589_v56  ;;  %1051 = vmatprep.mubr.bf16.mxu1 %v591_v59  ;;  %v2231_v56 = vcombine.low %v1070_v44, %v1072_v45  ;;  %v2292_v59 = vcombine.high %v1130_v52, %v1132_v53  ;;  %v2291_v1 = vcombine.low %v1130_v52, %v1132_v53  ;;  %v1115_v28 = vld [vmem:[#allocation6 + $0x2d8] sm:$0xff] }
 0x147   :  { %1009 = vmatmul.mubr.bf16.vlgmr.msra.gmra.mxu0 %v588_v57  ;;  %1052 = vmatmul.mubr.bf16.vlgmr.msra.gmra.mxu1 %v590_v61  ;;  %v2233_v57 = vcombine.low %v1071_v46, %v1073_v47  ;;  %v1126_v61 = vld [vmem:[#allocation6 + $0x390] sm:$0xff]  ;;  %v1117_v29 = vld [vmem:[#allocation6 + $0x2f8] sm:$0xff]  ;;  %v2281_v31 = vcombine.low %v1119_v16, %v1121_v17 }
 0x148   :  { %1477 = vmatpush1.bf16.msra.mxu0 %v2259_v14  ;;  %1520 = vmatpush1.bf16.msra.mxu1 %v2261_v15  ;;  %v2248_v14 = vcombine.high %v1086_v7, %v1088_v8  ;;  %v2250_v15 = vcombine.high %v1087_v10, %v1089_v11  ;;  %v1123_v7 = vld [vmem:[#allocation6 + $0x358] sm:$0xff]  ;;  %v2289_v11 = vcombine.low %v1127_v63, %v1129_v0 }
 0x149   :  { %1478 = vmatprep.subr.bf16.mxu0 %v2256_v60  ;;  %1521 = vmatprep.subr.bf16.mxu1 %v2258_v62  ;;  %v2294_v60 = vcombine.high %v1131_v54, %v1133_v55  ;;  %v1128_v62 = vld [vmem:[#allocation6 + $0x3b0] sm:$0xff]  ;;  %v1125_v8 = vld [vmem:[#allocation6 + $0x378] sm:$0xff]  ;;  %v2277_v39 = vcombine.low %v1115_v28, %v1117_v29 }
 0x14a   :  { %1508 = vmatprep.mubr.bf16.mxu0 %v2730_v58  ;;  %1551 = vmatprep.mubr.bf16.mxu1 %v2730_v58  ;;  %v2246_v58 = vcombine.high %v1083_v22, %v1085_v24  ;;  %v2287_v10 = vcombine.low %v1126_v61, %v1128_v62  ;;  %v2285_v24 = vcombine.low %v1123_v7, %v1125_v8  ;;  %v1111_v36 = vld [vmem:[#allocation6 + $0x298] sm:$0xff] }
 0x14b   :  { %v1113_v37 = vld [vmem:[#allocation6 + $0x2b8] sm:$0xff] }
 0x14c   :  { %1479 = vmatpush1.bf16.msra.mxu0 %v2255_v3  ;;  %1522 = vmatpush1.bf16.msra.mxu1 %v2257_v4  ;;  %v2288_v3 = vcombine.high %v1126_v61, %v1128_v62  ;;  %v2290_v4 = vcombine.high %v1127_v63, %v1129_v0  ;;  %v1107_v44 = vld [vmem:[#allocation6 + $0x258] sm:$0xff]  ;;  %v2273_v47 = vcombine.low %v1111_v36, %v1113_v37 }
 0x14d   :  { %1480 = vmatprep.subr.bf16.mxu0 %v2252_v5  ;;  %1523 = vmatprep.subr.bf16.mxu1 %v2254_v6  ;;  %v1122_v5 = vld [vmem:[#allocation6 + $0x350] sm:$0xff]  ;;  %v1109_v45 = vld [vmem:[#allocation6 + $0x278] sm:$0xff] }
 0x14e   :  { %v1124_v6 = vld [vmem:[#allocation6 + $0x370] sm:$0xff]  ;;  %v1103_v52 = vld [vmem:[#allocation6 + $0x218] sm:$0xff]  ;;  %v2269_v55 = vcombine.low %v1107_v44, %v1109_v45 }
 0x14f   :  { %v2283_v22 = vcombine.low %v1122_v5, %v1124_v6  ;;  %v1105_v53 = vld [vmem:[#allocation6 + $0x238] sm:$0xff] }
 0x150   :  { %1481 = vmatpush1.bf16.msra.mxu0 %v2251_v12  ;;  %1524 = vmatpush1.bf16.msra.mxu1 %v2253_v13  ;;  %v2284_v12 = vcombine.high %v1122_v5, %v1124_v6  ;;  %v2286_v13 = vcombine.high %v1123_v7, %v1125_v8  ;;  %v2466_v61 = vld [vmem:[#allocation9 + $0x270] ss:$8 sps:$4 sm:$0xff]   ;;  %v2468_v62 = vld [vmem:[#allocation9 + $0x274] ss:$8 sps:$4 sm:$0xff]   ;;  %v2486_v8 = vld [vmem:[#allocation9 + $0x244] ss:$8 sps:$4 sm:$0xff]  }
 0x151   :  { %1482 = vmatprep.subr.bf16.mxu0 %v2248_v14  ;;  %1525 = vmatprep.subr.bf16.mxu1 %v2250_v15  ;;  %v1118_v14 = vld [vmem:[#allocation6 + $0x310] sm:$0xff]  ;;  %v2469_v63 = vld [vmem:[#allocation9 + $0x370] ss:$8 sps:$4 sm:$0xff]   ;;  %v2471_v0 = vld [vmem:[#allocation9 + $0x374] ss:$8 sps:$4 sm:$0xff]  }
 0x152   :  { %v1120_v15 = vld [vmem:[#allocation6 + $0x330] sm:$0xff]  ;;  %v2480_v5 = vld [vmem:[#allocation9 + $0x254] ss:$8 sps:$4 sm:$0xff]   ;;  %v2478_v7 = vld [vmem:[#allocation9 + $0x250] ss:$8 sps:$4 sm:$0xff]  }
 0x153   :  { %v2279_v30 = vcombine.low %v1118_v14, %v1120_v15  ;;  %v2483_v6 = vld [vmem:[#allocation9 + $0x354] ss:$8 sps:$4 sm:$0xff]  }
 0x154   :  { %1483 = vmatpush1.bf16.msra.mxu0 %v2247_v25  ;;  %1526 = vmatpush1.bf16.msra.mxu1 %v2249_v26  ;;  %v2280_v25 = vcombine.high %v1118_v14, %v1120_v15  ;;  %v2282_v26 = vcombine.high %v1119_v16, %v1121_v17  ;;  %v2495_v14 = vld [vmem:[#allocation9 + $0x334] ss:$8 sps:$4 sm:$0xff]   ;;  %v2490_v15 = vld [vmem:[#allocation9 + $0x230] ss:$8 sps:$4 sm:$0xff]   ;;  %v2498_v17 = vld [vmem:[#allocation9 + $0x224] ss:$8 sps:$4 sm:$0xff]  }
 0x155   :  { %1484 = vmatprep.subr.bf16.mxu0 %v2244_v27  ;;  %1527 = vmatprep.subr.bf16.mxu1 %v2246_v58  ;;  %v1114_v27 = vld [vmem:[#allocation6 + $0x2d0] sm:$0xff]  ;;  %v2493_v16 = vld [vmem:[#allocation9 + $0x330] ss:$8 sps:$4 sm:$0xff]  }
 0x156   :  { %v1116_v58 = vld [vmem:[#allocation6 + $0x2f0] sm:$0xff] }
 0x157   :  { %v2275_v38 = vcombine.low %v1114_v27, %v1116_v58 }
 0x158   :  { %1485 = vmatpush1.bf16.msra.mxu0 %v2243_v32  ;;  %1528 = vmatpush1.bf16.msra.mxu1 %v2245_v33  ;;  %v2276_v32 = vcombine.high %v1114_v27, %v1116_v58  ;;  %v2278_v33 = vcombine.high %v1115_v28, %v1117_v29  ;;  %v2507_v27 = vld [vmem:[#allocation9 + $0x314] ss:$8 sps:$4 sm:$0xff]   ;;  %v2502_v58 = vld [vmem:[#allocation9 + $0x210] ss:$8 sps:$4 sm:$0xff]   ;;  %v2510_v29 = vld [vmem:[#allocation9 + $0x204] ss:$8 sps:$4 sm:$0xff]  }
 0x159   :  { %1486 = vmatprep.subr.bf16.mxu0 %v2240_v34  ;;  %1529 = vmatprep.subr.bf16.mxu1 %v2242_v35  ;;  %v1110_v34 = vld [vmem:[#allocation6 + $0x290] sm:$0xff]  ;;  %v2505_v28 = vld [vmem:[#allocation9 + $0x310] ss:$8 sps:$4 sm:$0xff]  }
 0x15a   :  { %v1112_v35 = vld [vmem:[#allocation6 + $0x2b0] sm:$0xff] }
 0x15b   :  { %v2271_v46 = vcombine.low %v1110_v34, %v1112_v35 }
 0x15c   :  { %1487 = vmatpush1.bf16.msra.mxu0 %v2239_v40  ;;  %1530 = vmatpush1.bf16.msra.mxu1 %v2241_v41  ;;  %v2272_v40 = vcombine.high %v1110_v34, %v1112_v35  ;;  %v2274_v41 = vcombine.high %v1111_v36, %v1113_v37  ;;  %v2519_v34 = vld [vmem:[#allocation9 + $0x3f4] ss:$8 sps:$4 sm:$0xff]   ;;  %v2514_v35 = vld [vmem:[#allocation9 + $0x2f0] ss:$8 sps:$4 sm:$0xff]   ;;  %v2522_v37 = vld [vmem:[#allocation9 + $0x2e4] ss:$8 sps:$4 sm:$0xff]  }
 0x15d   :  { %1488 = vmatprep.subr.bf16.mxu0 %v2236_v42  ;;  %1531 = vmatprep.subr.bf16.mxu1 %v2238_v43  ;;  %v1106_v42 = vld [vmem:[#allocation6 + $0x250] sm:$0xff]  ;;  %v2517_v36 = vld [vmem:[#allocation9 + $0x3f0] ss:$8 sps:$4 sm:$0xff]  }
 0x15e   :  { %v1108_v43 = vld [vmem:[#allocation6 + $0x270] sm:$0xff] }
 0x15f   :  { %v2267_v54 = vcombine.low %v1106_v42, %v1108_v43 }
 0x160   :  { %1489 = vmatpush1.bf16.msra.mxu0 %v2235_v48  ;;  %1532 = vmatpush1.bf16.msra.mxu1 %v2237_v49  ;;  %v2268_v48 = vcombine.high %v1106_v42, %v1108_v43  ;;  %v2270_v49 = vcombine.high %v1107_v44, %v1109_v45  ;;  %v2531_v42 = vld [vmem:[#allocation9 + $0x3d4] ss:$8 sps:$4 sm:$0xff]   ;;  %v2526_v43 = vld [vmem:[#allocation9 + $0x2d0] ss:$8 sps:$4 sm:$0xff]   ;;  %v2534_v45 = vld [vmem:[#allocation9 + $0x2c4] ss:$8 sps:$4 sm:$0xff]  }
 0x161   :  { %1490 = vmatprep.subr.bf16.mxu0 %v2232_v50  ;;  %1533 = vmatprep.subr.bf16.mxu1 %v2234_v51  ;;  %v1102_v50 = vld [vmem:[#allocation6 + $0x210] sm:$0xff]  ;;  %v2529_v44 = vld [vmem:[#allocation9 + $0x3d0] ss:$8 sps:$4 sm:$0xff]  }
 0x162   :  { %v1104_v51 = vld [vmem:[#allocation6 + $0x230] sm:$0xff] }
 0x164   :  { %1491 = vmatpush1.bf16.msra.mxu0 %v2231_v56  ;;  %1534 = vmatpush1.bf16.msra.mxu1 %v2233_v57  ;;  %v2264_v56 = vcombine.high %v1102_v50, %v1104_v51  ;;  %v2266_v57 = vcombine.high %v1103_v52, %v1105_v53 }
 0x165   :  { %1492 = vmatprep.subr.bf16.mxu0 %v2292_v59  ;;  %1535 = vmatprep.subr.bf16.mxu1 %v2294_v60  ;;  %v2263_v59 = vcombine.low %v1102_v50, %v1104_v51  ;;  %v2265_v60 = vcombine.low %v1103_v52, %v1105_v53  ;;  %v2543_v50 = vld [vmem:[#allocation9 + $0x3b4] ss:$8 sps:$4 sm:$0xff]   ;;  %v2538_v51 = vld [vmem:[#allocation9 + $0x2b0] ss:$8 sps:$4 sm:$0xff]   ;;  %v2546_v53 = vld [vmem:[#allocation9 + $0x2a4] ss:$8 sps:$4 sm:$0xff]  }
 0x166   :  { %v2541_v52 = vld [vmem:[#allocation9 + $0x3b0] ss:$8 sps:$4 sm:$0xff]  }
 0x168   :  { %1493 = vmatpush2.bf16.msra.mxu0 %v2291_v1  ;;  %1536 = vmatpush2.bf16.msra.mxu1 %v2293_v2  ;;  %v2474_v1 = vld [vmem:[#allocation9 + $0x264] ss:$8 sps:$4 sm:$0xff]  }
 0x169   :  { %1494 = vmatprep.subr.bf16.mxu0 %v2288_v3  ;;  %1537 = vmatprep.subr.bf16.mxu1 %v2290_v4  ;;  %v2477_v2 = vld [vmem:[#allocation9 + $0x364] ss:$8 sps:$4 sm:$0xff]   ;;  %v2472_v3 = vld [vmem:[#allocation9 + $0x260] ss:$8 sps:$4 sm:$0xff]  }
 0x16a   :  { %v2475_v4 = vld [vmem:[#allocation9 + $0x360] ss:$8 sps:$4 sm:$0xff]  }
 0x16c   :  { %1495 = vmatpush2.bf16.msra.mxu0 %v2287_v10  ;;  %1538 = vmatpush2.bf16.msra.mxu1 %v2289_v11  ;;  %v2489_v10 = vld [vmem:[#allocation9 + $0x344] ss:$8 sps:$4 sm:$0xff]   ;;  %v2484_v11 = vld [vmem:[#allocation9 + $0x240] ss:$8 sps:$4 sm:$0xff]  }
 0x16d   :  { %1496 = vmatprep.subr.bf16.mxu0 %v2284_v12  ;;  %1539 = vmatprep.subr.bf16.mxu1 %v2286_v13  ;;  %v2487_v12 = vld [vmem:[#allocation9 + $0x340] ss:$8 sps:$4 sm:$0xff]   ;;  %v2492_v13 = vld [vmem:[#allocation9 + $0x234] ss:$8 sps:$4 sm:$0xff]  }
 0x170   :  { %1497 = vmatpush2.bf16.msra.mxu0 %v2283_v22  ;;  %1540 = vmatpush2.bf16.msra.mxu1 %v2285_v24  ;;  %v2501_v22 = vld [vmem:[#allocation9 + $0x324] ss:$8 sps:$4 sm:$0xff]   ;;  %v2496_v24 = vld [vmem:[#allocation9 + $0x220] ss:$8 sps:$4 sm:$0xff]  }
 0x171   :  { %1498 = vmatprep.subr.bf16.mxu0 %v2280_v25  ;;  %1541 = vmatprep.subr.bf16.mxu1 %v2282_v26  ;;  %v2499_v25 = vld [vmem:[#allocation9 + $0x320] ss:$8 sps:$4 sm:$0xff]   ;;  %v2504_v26 = vld [vmem:[#allocation9 + $0x214] ss:$8 sps:$4 sm:$0xff]  }
 0x174   :  { %1499 = vmatpush2.bf16.msra.mxu0 %v2279_v30  ;;  %1542 = vmatpush2.bf16.msra.mxu1 %v2281_v31  ;;  %v2513_v30 = vld [vmem:[#allocation9 + $0x304] ss:$8 sps:$4 sm:$0xff]   ;;  %v2508_v31 = vld [vmem:[#allocation9 + $0x200] ss:$8 sps:$4 sm:$0xff]  }
 0x175   :  { %1500 = vmatprep.subr.bf16.mxu0 %v2276_v32  ;;  %1543 = vmatprep.subr.bf16.mxu1 %v2278_v33  ;;  %v2511_v32 = vld [vmem:[#allocation9 + $0x300] ss:$8 sps:$4 sm:$0xff]   ;;  %v2516_v33 = vld [vmem:[#allocation9 + $0x2f4] ss:$8 sps:$4 sm:$0xff]  }
 0x178   :  { %1501 = vmatpush2.bf16.msra.mxu0 %v2275_v38  ;;  %1544 = vmatpush2.bf16.msra.mxu1 %v2277_v39  ;;  %v2525_v38 = vld [vmem:[#allocation9 + $0x3e4] ss:$8 sps:$4 sm:$0xff]   ;;  %v2520_v39 = vld [vmem:[#allocation9 + $0x2e0] ss:$8 sps:$4 sm:$0xff]  }
 0x179   :  { %1502 = vmatprep.subr.bf16.mxu0 %v2272_v40  ;;  %1545 = vmatprep.subr.bf16.mxu1 %v2274_v41  ;;  %v2523_v40 = vld [vmem:[#allocation9 + $0x3e0] ss:$8 sps:$4 sm:$0xff]   ;;  %v2528_v41 = vld [vmem:[#allocation9 + $0x2d4] ss:$8 sps:$4 sm:$0xff]  }
 0x17c   :  { %1503 = vmatpush2.bf16.msra.mxu0 %v2271_v46  ;;  %1546 = vmatpush2.bf16.msra.mxu1 %v2273_v47  ;;  %v2537_v46 = vld [vmem:[#allocation9 + $0x3c4] ss:$8 sps:$4 sm:$0xff]   ;;  %v2532_v47 = vld [vmem:[#allocation9 + $0x2c0] ss:$8 sps:$4 sm:$0xff]  }
 0x17d   :  { %1504 = vmatprep.subr.bf16.mxu0 %v2268_v48  ;;  %1547 = vmatprep.subr.bf16.mxu1 %v2270_v49  ;;  %v2535_v48 = vld [vmem:[#allocation9 + $0x3c0] ss:$8 sps:$4 sm:$0xff]   ;;  %v2540_v49 = vld [vmem:[#allocation9 + $0x2b4] ss:$8 sps:$4 sm:$0xff]  }
 0x180   :  { %1505 = vmatpush2.bf16.msra.mxu0 %v2267_v54  ;;  %1548 = vmatpush2.bf16.msra.mxu1 %v2269_v55  ;;  %v2549_v54 = vld [vmem:[#allocation9 + $0x3a4] ss:$8 sps:$4 sm:$0xff]   ;;  %v2544_v55 = vld [vmem:[#allocation9 + $0x2a0] ss:$8 sps:$4 sm:$0xff]  }
 0x181   :  { %1506 = vmatprep.subr.bf16.mxu0 %v2264_v56  ;;  %1549 = vmatprep.subr.bf16.mxu1 %v2266_v57  ;;  %v2547_v56 = vld [vmem:[#allocation9 + $0x3a0] ss:$8 sps:$4 sm:$0xff]   ;;  %v2552_v57 = vld [vmem:[#allocation9 + $0x294] ss:$8 sps:$4 sm:$0xff]  }
 0x184   :  { %1507 = vmatpush2.bf16.msra.mxu0 %v2263_v59  ;;  %1550 = vmatpush2.bf16.msra.mxu1 %v2265_v60  ;;  %v2555_v59 = vld [vmem:[#allocation9 + $0x394] ss:$8 sps:$4 sm:$0xff]   ;;  %v2550_v60 = vld [vmem:[#allocation9 + $0x290] ss:$8 sps:$4 sm:$0xff]  }
 0x185   :  { %1962 = vmatprep.subr.bf16.mxu0 %v2468_v62  ;;  %2005 = vmatprep.subr.bf16.mxu1 %v2471_v0  ;;  %v2558_v62 = vld [vmem:[#allocation9 + $0x284] ss:$8 sps:$4 sm:$0xff]   ;;  %v2556_v0 = vld [vmem:[#allocation9 + $0x280] ss:$8 sps:$4 sm:$0xff]  }
 0x187   :  { %1509 = vmatmul.mubr.bf16.vlgmr.msra.gmra.mxu0 %v2734_v9  ;;  %1552 = vmatmul.mubr.bf16.vlgmr.msra.gmra.mxu1 %v2734_v9  ;;  %v2481_v9 = vld [vmem:[#allocation9 + $0x350] ss:$8 sps:$4 sm:$0xff]  }
 0x188   :  { %1963 = vmatpush1.bf16.msra.mxu0 %v2466_v61  ;;  %2006 = vmatpush1.bf16.msra.mxu1 %v2469_v63  ;;  %v2553_v61 = vld [vmem:[#allocation9 + $0x390] ss:$8 sps:$4 sm:$0xff]   ;;  %v2561_v63 = vld [vmem:[#allocation9 + $0x384] ss:$8 sps:$4 sm:$0xff]  }
 0x189   :  { %1964 = vmatprep.subr.bf16.mxu0 %v2474_v1  ;;  %2007 = vmatprep.subr.bf16.mxu1 %v2477_v2  ;;  %v2559_v1 = vld [vmem:[#allocation9 + $0x380] ss:$8 sps:$4 sm:$0xff]  }
 0x18c   :  { %1965 = vmatpush1.bf16.msra.mxu0 %v2472_v3  ;;  %2008 = vmatpush1.bf16.msra.mxu1 %v2475_v4 }
 0x18d   :  { %1966 = vmatprep.subr.bf16.mxu0 %v2480_v5  ;;  %2009 = vmatprep.subr.bf16.mxu1 %v2483_v6 }
 0x190   :  { %1967 = vmatpush1.bf16.msra.mxu0 %v2478_v7  ;;  %2010 = vmatpush1.bf16.msra.mxu1 %v2481_v9 }
 0x191   :  { %1968 = vmatprep.subr.bf16.mxu0 %v2486_v8  ;;  %2011 = vmatprep.subr.bf16.mxu1 %v2489_v10 }
 0x194   :  { %1969 = vmatpush1.bf16.msra.mxu0 %v2484_v11  ;;  %2012 = vmatpush1.bf16.msra.mxu1 %v2487_v12 }
 0x195   :  { %1970 = vmatprep.subr.bf16.mxu0 %v2492_v13  ;;  %2013 = vmatprep.subr.bf16.mxu1 %v2495_v14  ;;  %v1134_v14 = vld [vmem:[#allocation8 + $0x4] sm:$0xf] }
 0x198   :  { %1971 = vmatpush1.bf16.msra.mxu0 %v2490_v15  ;;  %2014 = vmatpush1.bf16.msra.mxu1 %v2493_v16 }
 0x199   :  { %1972 = vmatprep.subr.bf16.mxu0 %v2498_v17  ;;  %2015 = vmatprep.subr.bf16.mxu1 %v2501_v22  ;;  %v1143_v17 = vrot.slane %v1134_v14, %v2749_v19  ;;  %v1139_v22 = vrot.slane %v1134_v14, %v2752_v20 }
 0x19c   :  { %1973 = vmatpush1.bf16.msra.mxu0 %v2496_v24  ;;  %2016 = vmatpush1.bf16.msra.mxu1 %v2499_v25  ;;  %v1151_v25 = vrot.slane %v1134_v14, %v164_v21 }
 0x19d   :  { %1974 = vmatprep.subr.bf16.mxu0 %v2504_v26  ;;  %2017 = vmatprep.subr.bf16.mxu1 %v2507_v27  ;;  %v1147_v26 = vrot.slane %v1134_v14, %v160_v23  ;;  %v2565_v14 = vld [vmem:[#allocation3 + $0x18] sm:$0xff] }
 0x1a0   :  { %1975 = vmatpush1.bf16.msra.mxu0 %v2502_v58  ;;  %2018 = vmatpush1.bf16.msra.mxu1 %v2505_v28 }
 0x1a1   :  { %1976 = vmatprep.subr.bf16.mxu0 %v2510_v29  ;;  %2019 = vmatprep.subr.bf16.mxu1 %v2513_v30 }
 0x1a4   :  { %1977 = vmatpush1.bf16.msra.mxu0 %v2508_v31  ;;  %2020 = vmatpush1.bf16.msra.mxu1 %v2511_v32 }
 0x1a5   :  { %1978 = vmatprep.subr.bf16.mxu0 %v2516_v33  ;;  %2021 = vmatprep.subr.bf16.mxu1 %v2519_v34 }
 0x1a8   :  { %1979 = vmatpush2.bf16.msra.mxu0 %v2514_v35  ;;  %2022 = vmatpush2.bf16.msra.mxu1 %v2517_v36 }
 0x1a9   :  { %1980 = vmatprep.subr.bf16.mxu0 %v2522_v37  ;;  %2023 = vmatprep.subr.bf16.mxu1 %v2525_v38 }
 0x1ac   :  { %1981 = vmatpush2.bf16.msra.mxu0 %v2520_v39  ;;  %2024 = vmatpush2.bf16.msra.mxu1 %v2523_v40 }
 0x1ad   :  { %1982 = vmatprep.subr.bf16.mxu0 %v2528_v41  ;;  %2025 = vmatprep.subr.bf16.mxu1 %v2531_v42 }
 0x1b0   :  { %1983 = vmatpush2.bf16.msra.mxu0 %v2526_v43  ;;  %2026 = vmatpush2.bf16.msra.mxu1 %v2529_v44 }
 0x1b1   :  { %1984 = vmatprep.subr.bf16.mxu0 %v2534_v45  ;;  %2027 = vmatprep.subr.bf16.mxu1 %v2537_v46 }
 0x1b4   :  { %1985 = vmatpush2.bf16.msra.mxu0 %v2532_v47  ;;  %2028 = vmatpush2.bf16.msra.mxu1 %v2535_v48  ;;  %v2060_v48 = vld [vmem:[%s2790_s4] sm:$0x3]  ;;  %s2684_s4 = smov [#allocation11]  }
 0x1b5   :  { %1986 = vmatprep.subr.bf16.mxu0 %v2540_v49  ;;  %2029 = vmatprep.subr.bf16.mxu1 %v2543_v50  ;;  %s2089_s17 = sshll.u32 %s2684_s4, 4  ;;  %s2090_s17 = int_to_ptr.vmem [resolvable:$true] %s2089_s17 }
 0x1b6   :  { %s2646_s18 = scalar_lea.vmem %s2090_s17, 512  ;;  %p2651_p7 = scmp.lt.s32.totalorder %s2090_s17, %s2090_s17 }
 0x1b7   :  { %p2647_p6 = scmp.ne.s32.totalorder %s2090_s17, %s2646_s18  ;;  %p2652_p8 = scmp.lt.s32.totalorder %s2646_s18, %s2646_s18 }
 0x1b8   :  { %1987 = vmatpush2.bf16.msra.mxu0 %v2538_v51  ;;  %2030 = vmatpush2.bf16.msra.mxu1 %v2541_v52  ;;  %v2065_v52 = vrot.slane %v2060_v48, %v2752_v20  ;;  %v2563_v20 = vld [vmem:[#allocation3 + $0x8] sm:$0xff] }
 0x1b9   :  { %1988 = vmatprep.subr.bf16.mxu0 %v2546_v53  ;;  %2031 = vmatprep.subr.bf16.mxu1 %v2549_v54  ;;  %p2653_p9 = por %p2652_p8, %p2651_p7 }
 0x1bb   :  { %p2654_p10 = pnand %p2653_p9, %p2647_p6 }
 0x1bc   :  { %1989 = vmatpush2.bf16.msra.mxu0 %v2544_v55  ;;  %2032 = vmatpush2.bf16.msra.mxu1 %v2547_v56 }
 0x1bd   :  { %1990 = vmatprep.subr.bf16.mxu0 %v2552_v57  ;;  %2033 = vmatprep.subr.bf16.mxu1 %v2555_v59  ;;  %v2069_v57 = vrot.slane %v2060_v48, %v2749_v19  ;;  %v2564_v19 = vld [vmem:[#allocation3 + $0x10] sm:$0xff] }
 0x1c0   :  { %1991 = vmatpush2.bf16.msra.mxu0 %v2550_v60  ;;  %2034 = vmatpush2.bf16.msra.mxu1 %v2553_v61 }
 0x1c1   :  { %1992 = vmatprep.subr.bf16.mxu0 %v2558_v62  ;;  %2035 = vmatprep.subr.bf16.mxu1 %v2561_v63 }
 0x1c4   :  { %1993 = vmatpush2.bf16.msra.mxu0 %v2556_v0  ;;  %2036 = vmatpush2.bf16.msra.mxu1 %v2559_v1 }
 0x207   :  { %v1010_v2 = vpop.f32.mrf.mxu0  ;;  %v1053_v3 = vpop.f32.mrf.mxu1 }
 0x208   :  { %v1054_v4 = vadd.f32 %v1053_v3, %v1010_v2  ;;  %v2562_v2 = vld [vmem:[#allocation3] sm:$0xff] }
 0x209   :  { %v1012_v5 = vpop.f32.mrf.mxu0  ;;  %v1055_v6 = vpop.f32.mrf.mxu1 }
 0x20a   :  { %v1056_v7 = vadd.f32 %v1055_v6, %v1012_v5 }
 0x20b   :  { %v1014_v9 = vpop.f32.mrf.mxu0  ;;  %v1057_v8 = vpop.f32.mrf.mxu1 }
 0x20c   :  { %v1058_v10 = vadd.f32 %v1057_v8, %v1014_v9 }
 0x20d   :  { %v1016_v11 = vpop.f32.mrf.mxu0  ;;  %v1059_v12 = vpop.f32.mrf.mxu1 }
 0x20e   :  { %v2766_v13 = vadd.f32 %v1059_v12, %v1016_v11 }
 0x247   :  { %v1510_v15 = vpop.f32.mrf.mxu0  ;;  %v1553_v16 = vpop.f32.mrf.mxu1 }
 0x248   :  { %v1511_v31 = vadd.f32 %v1510_v15, %v1139_v22  ;;  %v1554_v35 = vadd.f32 %v1553_v16, %v1147_v26 }
 0x249   :  { %v1512_v24 = vpop.f32.mrf.mxu0  ;;  %v1555_v27 = vpop.f32.mrf.mxu1 }
 0x24a   :  { %v1513_v28 = vadd.f32 %v1512_v24, %v1143_v17  ;;  %v1556_v32 = vadd.f32 %v1555_v27, %v1151_v25  ;;  %v1562_v42 = vmax.f32 %v1511_v31, 0.0  ;;  %v1564_v43 = vmax.f32 %v1554_v35, 0.0 }
 0x24b   :  { %v1514_v58 = vpop.f32.mrf.mxu0  ;;  %v1557_v30 = vpop.f32.mrf.mxu1 }
 0x24c   :  { %v1515_v29 = vadd.f32 %v1514_v58, %v1139_v22  ;;  %v1558_v33 = vadd.f32 %v1557_v30, %v1147_v26  ;;  %v1563_v40 = vmax.f32 %v1513_v28, 0.0  ;;  %v1565_v18 = vmax.f32 %v1556_v32, 0.0 }
 0x24d   :  { %v1516_v34 = vpop.f32.mrf.mxu0  ;;  %v1559_v37 = vpop.f32.mrf.mxu1 }
 0x24e   :  { %v1517_v36 = vadd.f32 %v1516_v34, %v1143_v17  ;;  %v1566_v38 = vmax.f32 %v1515_v29, 0.0  ;;  %v1560_v39 = vadd.f32 %v1559_v37, %v1151_v25  ;;  %v1568_v41 = vmax.f32 %v1558_v33, 0.0 }
 0x250   :  { %v1567_v21 = vmax.f32 %v1517_v36, 0.0  ;;  %v1569_v23 = vmax.f32 %v1560_v39, 0.0  ;;  %v1574_v45 = vpack.c.bf16 %v1566_v38, %v1562_v42  ;;  %v1576_v47 = vpack.c.bf16 %v1568_v41, %v1564_v43 }
 0x252   :  { %v1575_v44 = vpack.c.bf16 %v1567_v21, %v1563_v40  ;;  %v1577_v46 = vpack.c.bf16 %v1569_v23, %v1565_v18 }
 0x254   :  { %1994 = vmatprep.mubr.bf16.mxu0 %v1575_v44  ;;  %2037 = vmatprep.mubr.bf16.mxu1 %v1577_v46 }
 0x255   :  { %1995 = vmatmul.mubr.bf16.vlgmr.msra.gmra.mxu0 %v1574_v45  ;;  %2038 = vmatmul.mubr.bf16.vlgmr.msra.gmra.mxu1 %v1576_v47 }
 0x315   :  { %v1996_v49 = vpop.f32.mrf.mxu0  ;;  %v2039_v50 = vpop.f32.mrf.mxu1 }
 0x316   :  { %v2040_v51 = vadd.f32 %v2039_v50, %v1996_v49 }
 0x317   :  { %v1998_v53 = vpop.f32.mrf.mxu0  ;;  %v2041_v54 = vpop.f32.mrf.mxu1 }
 0x318   :  { %v2048_v55 = vadd.f32 %v2040_v51, %v1054_v4  ;;  %v2042_v56 = vadd.f32 %v2041_v54, %v1998_v53 }
 0x319   :  { %v2000_v59 = vpop.f32.mrf.mxu0  ;;  %v2043_v60 = vpop.f32.mrf.mxu1 }
 0x31a   :  { %v2072_v61 = vadd.f32 %v2065_v52, %v2048_v55  ;;  %v2049_v62 = vadd.f32 %v2042_v56, %v1056_v7  ;;  %v2044_v63 = vadd.f32 %v2043_v60, %v2000_v59 }
 0x31b   :  { %v2002_v0 = vpop.f32.mrf.mxu0  ;;  %v2045_v1 = vpop.f32.mrf.mxu1 }
 0x31c   :  { %v2076_v3 = vadd.f32 %v2562_v2, %v2072_v61  ;;  %v2073_v5 = vadd.f32 %v2069_v57, %v2049_v62  ;;  %v2050_v6 = vadd.f32 %v2044_v63, %v1058_v10  ;;  %v2046_v9 = vadd.f32 %v2045_v1, %v2002_v0 }
 0x31e   :  { %2080 = vst [vmem:[#allocation11] sm:$0xff] %v2076_v3  ;;  %v2077_v8 = vadd.f32 %v2563_v20, %v2073_v5  ;;  %v2074_v11 = vadd.f32 %v2065_v52, %v2050_v6  ;;  %v2051_v4 = vadd.f32 %v2046_v9, %v2766_v13 }
 0x320   :  { %2081 = vst [vmem:[#allocation11 + $0x8] sm:$0xff] %v2077_v8  ;;  %v2078_v12 = vadd.f32 %v2564_v19, %v2074_v11  ;;  %v2075_v7 = vadd.f32 %v2069_v57, %v2051_v4 }
 0x322   :  { %2082 = vst [vmem:[#allocation11 + $0x10] sm:$0xff] %v2078_v12  ;;  %v2079_v15 = vadd.f32 %v2565_v14, %v2075_v7 }
 0x324   :  { %2083 = vst [vmem:[#allocation11 + $0x18] sm:$0xff] %v2079_v15 }
 0x325   :  { %2657 = shalt.err (!%p2654_p10)
}
 0x326   :  { %2095 = dma.vmem_to_hbm [thread:$0]  %s2090_s17, 512, %s2791_s5, [#allocation5], %s2678_s28, %s2678_s28, %s2679_s29  }
 0x327   :  { %2672 = dma.done.wait [#allocation5], 512  }
 0x328   :  { %2673 = vsyncadd [#allocation5], 4294966784 }
 0x329   :  { %2099 = vsyncpa [#allocation4], 1 }
 0x32a   :  { %2100 = vsyncpa [#allocation7], 1 }
 0x32b   :  { %2101 = vsyncpa [#allocation10], 1 }
 0x32c   :  { %2102 = vsyncpa [#allocation5], 1 }

</bundles_post_ra>
